<compile_context>
chip_gen: v5e
topology: v5e:2x2
jax: 0.10.0
libtpu: 0.0.40
codegen_flags: <defaults>
</compile_context>

<pallas_src>
import jax
import jax.numpy as jnp
from jax.experimental import pallas as pl
from jax.experimental.pallas import tpu as pltpu


# ---------------------------------------------------------------------------
# Pallas kernels
# ---------------------------------------------------------------------------
def _congruence_kernel(xi_ref, p_ref, m_ref):
    """M[b, c] = X_b^{-1/2} @ P_c @ X_b^{-1/2} for a tile of TB batch elements.

    Step 1: one sublane-stacked MXU matmul over the whole tile and all classes:
            (TB*n, n) @ (n, C*n)  ->  block (b, c) = X_b^{-1/2} P_c
    Step 2: per batch element, relayout the C lane-blocks onto sublanes and do a
            single (C*n, n) @ (n, n) dot against X_b^{-1/2} (no block-diagonal
            operand, no C x redundant FLOPs), writing (C, n, n) directly.
    """
    tb, n, _ = xi_ref.shape
    cn = p_ref.shape[-1]
    c = cn // n

    xi = xi_ref[...]                                             # (TB, n, n)
    # --- step 1: one big MXU matmul (batch stacked along sublanes) -----------
    w = jnp.dot(xi.reshape(tb * n, n), p_ref[...],
                preferred_element_type=jnp.float32)              # (TB*n, C*n)

    # --- step 2: per-b (C*n, n) @ (n, n) against the single X_b^{-1/2} -------
    for b in range(tb):                                          # static unroll, TB small
        wb = w[b * n:(b + 1) * n, :]                             # (n, C*n): [X_b^-1/2 P_0 | ...]
        # class lane-blocks -> sublane stack (cheap sublane relayout, no blockdiag)
        wbs = jnp.concatenate([wb[:, j * n:(j + 1) * n] for j in range(c)],
                              axis=0)                            # (C*n, n)
        mb = jnp.dot(wbs, xi[b], preferred_element_type=jnp.float32)  # (C*n, n)
        m_ref[b] = mb.reshape(c, n, n)                           # final (C, n, n) layout


def _dist_kernel(lam_ref, out_ref):
    """dist[b, c] = sum_i (log(lam_i)/lam_i)^2 over eigenvalues of M_{b,c}.

    Single gridless invocation over the full (B, C, n) block; VPU/EUP only.
    """
    lam = lam_ref[...]                                           # (B, C, n)
    lam_max = jnp.max(lam, axis=-1, keepdims=True)
    floor = jnp.maximum(lam_max * jnp.float32(1e-7), jnp.float32(1e-12))
    lam = jnp.maximum(lam, floor)                                # relative floor (no overflow)
    r = jnp.log(lam) / lam
    out_ref[...] = jnp.sum(r * r, axis=-1)                       # (B, C)


# ---------------------------------------------------------------------------
# pallas_call wrappers
# ---------------------------------------------------------------------------
def _pick_tb(b, n):
    """Batch-tile size: fill >= ~256 sublanes per step when possible, divide B,
    and keep >= 2 grid steps (megacore) once sublanes are already filled."""
    target = max(1, 512 // n)
    tb = 1
    for d in range(1, b + 1):
        if b % d == 0 and d <= target:
            tb = d
    while (b // tb) < 2 and tb % 2 == 0 and (tb // 2) * n >= 128:
        tb //= 2
    return tb


def _congruence(x_isqrt, p_lanes, tb):
    B, n, _ = x_isqrt.shape
    cn = p_lanes.shape[1]
    c = cn // n
    return pl.pallas_call(
        _congruence_kernel,
        out_shape=jax.ShapeDtypeStruct((B, c, n, n), jnp.float32),
        grid=(B // tb,),
        in_specs=[
            pl.BlockSpec((tb, n, n), lambda i: (i, 0, 0)),       # X^{-1/2} batch tile
            pl.BlockSpec((n, cn), lambda i: (0, 0)),             # prototypes: VMEM-resident
        ],
        out_specs=pl.BlockSpec((tb, c, n, n), lambda i: (i, 0, 0, 0)),
        compiler_params=pltpu.CompilerParams(
            dimension_semantics=("parallel",)),                  # v7x: shard batch over TCs
    )(x_isqrt, p_lanes)


def _dist_from_eigs(lam_m):
    B, C, _ = lam_m.shape
    return pl.pallas_call(                                       # single gridless step
        _dist_kernel,
        out_shape=jax.ShapeDtypeStruct((B, C), jnp.float32),
    )(lam_m)


@jax.jit
def riemannian_geodesic_distance(x, prototypes):
    """x: (B, n, n) SPD, prototypes: (C, n, n) SPD -> (B, C) squared distances."""
    B, n, _ = x.shape
    C = prototypes.shape[0]

    # TODO(synk): symmetric eigendecomposition has no clean Pallas equivalent;
    # eigh / eigvalsh stay in XLA (they dominate end-to-end runtime anyway).
    lam_x, u_x = jnp.linalg.eigh(x)
    u_xt = jnp.swapaxes(u_x, -1, -2)
    x_isqrt = (u_x * jax.lax.rsqrt(lam_x)[..., None, :]) @ u_xt            # (B, n, n)

    # prototypes lane-packed once: (n, C*n), column block c = P_c
    p_lanes = jnp.swapaxes(prototypes, 0, 1).reshape(n, C * n)

    # hot path 1 (Pallas): M[b, c] = X_b^{-1/2} P_c X_b^{-1/2}, written in final layout
    tb = _pick_tb(B, n)
    m = _congruence(x_isqrt.astype(jnp.float32),
                    p_lanes.astype(jnp.float32), tb)                        # (B, C, n, n)

    lam_m = jnp.linalg.eigvalsh(m)                                           # (B, C, n)

    # hot path 2 (Pallas): dist[b,c] = sum_i (log(lam)/lam)^2 -- no matmuls
    return _dist_from_eigs(lam_m.astype(jnp.float32))                       # (B, C)


# ---------------------------------------------------------------------------
# pure-JAX reference (mirrors the geoopt logmap / inner path, full matrix form)
# ---------------------------------------------------------------------------
def _reference(x, prototypes):
    lam_x, u_x = jnp.linalg.eigh(x)
    u_xt = jnp.swapaxes(u_x, -1, -2)
    s = jnp.sqrt(lam_x)
    x_sqrt = (u_x * s[..., None, :]) @ u_xt
    x_isqrt = (u_x * (1.0 / s)[..., None, :]) @ u_xt
    dists = []
    for c in range(prototypes.shape[0]):
        p = prototypes[c]
        m = x_isqrt @ p @ x_isqrt
        lam_m, u_m = jnp.linalg.eigh(m)
        logm = (u_m * jnp.log(lam_m)[..., None, :]) @ jnp.swapaxes(u_m, -1, -2)
        log_x_p = x_sqrt @ logm @ x_sqrt
        a = jnp.linalg.inv(p) @ log_x_p
        dists.append(jnp.trace(a @ a, axis1=-2, axis2=-1))
    return jnp.stack(dists, axis=1)


if __name__ == "__main__":
    B, C, n = 2, 4, 16
    key = jax.random.PRNGKey(0)
    k_x, k_p = jax.random.split(key)

    # Parameters (deterministic, mirrors __init__'s 'random_spd': A A^T + 0.01 I)
    a = jax.random.normal(k_p, (C, n, n), dtype=jnp.float32)
    prototypes = a @ jnp.swapaxes(a, -1, -2) + 0.01 * jnp.eye(n, dtype=jnp.float32)
    scale = jnp.float32(1.0)  # parity with the module's learnable scale; unused in forward

    # SPD inputs, kept well conditioned
    g = jax.random.normal(k_x, (B, n, n), dtype=jnp.float32)
    x = g @ jnp.swapaxes(g, -1, -2) / n + jnp.eye(n, dtype=jnp.float32)

    out = jax.block_until_ready(riemannian_geodesic_distance(x, prototypes))
    assert out.shape == (B, C) and out.dtype == jnp.float32

    ref = _reference(x, prototypes)
    err = float(jnp.max(jnp.abs(out - ref)) / jnp.maximum(jnp.max(jnp.abs(ref)), 1.0))
    assert bool(jnp.all(jnp.isfinite(out))) and err < 1e-2, f"mismatch: err={err}"
    print("KERNEL_OK")
</pallas_src>

<mosaic_0001>
module attributes {stable_mosaic.version = 11 : i64} {
  func.func @_congruence_kernel(%arg0: i32, %arg1: memref<2x16x16xf32, #tpu.memory_space<vmem>>, %arg2: memref<16x64xf32, #tpu.memory_space<vmem>>, %arg3: memref<2x4x16x16xf32, #tpu.memory_space<vmem>>) attributes {dimension_semantics = [#tpu.dimension_semantics<parallel>], iteration_bounds = array<i64: 1>, scalar_prefetch = 0 : i64, scratch_operands = 0 : i64, tpu.core_type = #tpu.core_type<tc>, window_params = [{transform_indices = @transform_0, window_bounds = array<i64: 2, 16, 16>}, {pipeline_mode = #tpu.pipeline_mode<synchronous>, transform_indices = @transform_1, window_bounds = array<i64: 16, 64>}, {transform_indices = @transform_2, window_bounds = array<i64: 2, 4, 16, 16>}]} {
    %c0 = arith.constant 0 : index
    %c0_0 = arith.constant 0 : index
    %c0_1 = arith.constant 0 : index
    %0 = vector.load %arg1[%c0, %c0_0, %c0_1] : memref<2x16x16xf32, #tpu.memory_space<vmem>>, vector<2x16x16xf32>
    %1 = vector.shape_cast %0 : vector<2x16x16xf32> to vector<32x16xf32>
    %c0_2 = arith.constant 0 : index
    %c0_3 = arith.constant 0 : index
    %2 = vector.load %arg2[%c0_2, %c0_3] : memref<16x64xf32, #tpu.memory_space<vmem>>, vector<16x64xf32>
    %cst = arith.constant dense<0.000000e+00> : vector<32x64xf32>
    %3 = tpu.matmul %1, %2, %cst {dimension_numbers = #tpu.dot_dimension_numbers<[1], [0], [0], [1], [0, 0, 1, 1], [], []>} : vector<32x16xf32>, vector<16x64xf32>, vector<32x64xf32> -> vector<32x64xf32>
    %4 = vector.extract_strided_slice %3 {offsets = [0, 0], sizes = [16, 64], strides = [1, 1]} : vector<32x64xf32> to vector<16x64xf32>
    %5 = vector.extract_strided_slice %4 {offsets = [0, 0], sizes = [16, 16], strides = [1, 1]} : vector<16x64xf32> to vector<16x16xf32>
    %6 = vector.extract_strided_slice %4 {offsets = [0, 16], sizes = [16, 16], strides = [1, 1]} : vector<16x64xf32> to vector<16x16xf32>
    %7 = vector.extract_strided_slice %4 {offsets = [0, 32], sizes = [16, 16], strides = [1, 1]} : vector<16x64xf32> to vector<16x16xf32>
    %8 = vector.extract_strided_slice %4 {offsets = [0, 48], sizes = [16, 16], strides = [1, 1]} : vector<16x64xf32> to vector<16x16xf32>
    %9 = tpu.concatenate %5, %6, %7, %8 in 0 : vector<16x16xf32>, vector<16x16xf32>, vector<16x16xf32>, vector<16x16xf32> -> vector<64x16xf32>
    %10 = vector.extract_strided_slice %0 {offsets = [0, 0, 0], sizes = [1, 16, 16], strides = [1, 1, 1]} : vector<2x16x16xf32> to vector<1x16x16xf32>
    %11 = vector.shape_cast %10 : vector<1x16x16xf32> to vector<16x16xf32>
    %cst_4 = arith.constant dense<0.000000e+00> : vector<64x16xf32>
    %12 = tpu.matmul %9, %11, %cst_4 {dimension_numbers = #tpu.dot_dimension_numbers<[1], [0], [0], [1], [0, 0, 1, 1], [], []>} : vector<64x16xf32>, vector<16x16xf32>, vector<64x16xf32> -> vector<64x16xf32>
    %13 = vector.shape_cast %12 : vector<64x16xf32> to vector<4x16x16xf32>
    %c0_5 = arith.constant 0 : index
    %c0_6 = arith.constant 0 : index
    %c0_7 = arith.constant 0 : index
    %c0_8 = arith.constant 0 : index
    %14 = vector.load %arg3[%c0_5, %c0_6, %c0_7, %c0_8] : memref<2x4x16x16xf32, #tpu.memory_space<vmem>>, vector<1x4x16x16xf32>
    %15 = vector.shape_cast %14 : vector<1x4x16x16xf32> to vector<4x16x16xf32>
    %16 = vector.shape_cast %13 : vector<4x16x16xf32> to vector<1x4x16x16xf32>
    tpu.vector_store %arg3[%c0_5, %c0_6, %c0_7, %c0_8], %16 {strides = array<i32>} : memref<2x4x16x16xf32, #tpu.memory_space<vmem>>, vector<1x4x16x16xf32>,
    %17 = vector.extract_strided_slice %3 {offsets = [16, 0], sizes = [16, 64], strides = [1, 1]} : vector<32x64xf32> to vector<16x64xf32>
    %18 = vector.extract_strided_slice %17 {offsets = [0, 0], sizes = [16, 16], strides = [1, 1]} : vector<16x64xf32> to vector<16x16xf32>
    %19 = vector.extract_strided_slice %17 {offsets = [0, 16], sizes = [16, 16], strides = [1, 1]} : vector<16x64xf32> to vector<16x16xf32>
    %20 = vector.extract_strided_slice %17 {offsets = [0, 32], sizes = [16, 16], strides = [1, 1]} : vector<16x64xf32> to vector<16x16xf32>
    %21 = vector.extract_strided_slice %17 {offsets = [0, 48], sizes = [16, 16], strides = [1, 1]} : vector<16x64xf32> to vector<16x16xf32>
    %22 = tpu.concatenate %18, %19, %20, %21 in 0 : vector<16x16xf32>, vector<16x16xf32>, vector<16x16xf32>, vector<16x16xf32> -> vector<64x16xf32>
    %23 = vector.extract_strided_slice %0 {offsets = [1, 0, 0], sizes = [1, 16, 16], strides = [1, 1, 1]} : vector<2x16x16xf32> to vector<1x16x16xf32>
    %24 = vector.shape_cast %23 : vector<1x16x16xf32> to vector<16x16xf32>
    %cst_9 = arith.constant dense<0.000000e+00> : vector<64x16xf32>
    %25 = tpu.matmul %22, %24, %cst_9 {dimension_numbers = #tpu.dot_dimension_numbers<[1], [0], [0], [1], [0, 0, 1, 1], [], []>} : vector<64x16xf32>, vector<16x16xf32>, vector<64x16xf32> -> vector<64x16xf32>
    %26 = vector.shape_cast %25 : vector<64x16xf32> to vector<4x16x16xf32>
    %c1 = arith.constant 1 : index
    %c0_10 = arith.constant 0 : index
    %c0_11 = arith.constant 0 : index
    %c0_12 = arith.constant 0 : index
    %27 = vector.load %arg3[%c1, %c0_10, %c0_11, %c0_12] : memref<2x4x16x16xf32, #tpu.memory_space<vmem>>, vector<1x4x16x16xf32>
    %28 = vector.shape_cast %27 : vector<1x4x16x16xf32> to vector<4x16x16xf32>
    %29 = vector.shape_cast %26 : vector<4x16x16xf32> to vector<1x4x16x16xf32>
    tpu.vector_store %arg3[%c1, %c0_10, %c0_11, %c0_12], %29 {strides = array<i32>} : memref<2x4x16x16xf32, #tpu.memory_space<vmem>>, vector<1x4x16x16xf32>,
    return
  }
  func.func @transform_0(%arg0: i32) -> (i32, i32, i32) {
    %c0_i32 = arith.constant 0 : i32
    %c0_i32_0 = arith.constant 0 : i32
    %c0_i32_1 = arith.constant 0 : i32
    return %arg0, %c0_i32, %c0_i32_0 : i32, i32, i32
  }
  func.func @transform_1(%arg0: i32) -> (i32, i32) {
    %c0_i32 = arith.constant 0 : i32
    %c0_i32_0 = arith.constant 0 : i32
    %c0_i32_1 = arith.constant 0 : i32
    return %c0_i32, %c0_i32_0 : i32, i32
  }
  func.func @transform_2(%arg0: i32) -> (i32, i32, i32, i32) {
    %c0_i32 = arith.constant 0 : i32
    %c0_i32_0 = arith.constant 0 : i32
    %c0_i32_1 = arith.constant 0 : i32
    %c0_i32_2 = arith.constant 0 : i32
    return %arg0, %c0_i32, %c0_i32_0, %c0_i32_1 : i32, i32, i32, i32
  }
}

module attributes {stable_mosaic.version = 11 : i64} {
  func.func @_dist_kernel(%arg0: memref<2x4x16xf32, #tpu.memory_space<vmem>>, %arg1: memref<2x4xf32, #tpu.memory_space<vmem>>) attributes {dimension_semantics = [], scalar_prefetch = 0 : i64, scratch_operands = 0 : i64, tpu.core_type = #tpu.core_type<tc>} {
    %c0 = arith.constant 0 : index
    %c0_0 = arith.constant 0 : index
    %c0_1 = arith.constant 0 : index
    %0 = vector.load %arg0[%c0, %c0_0, %c0_1] : memref<2x4x16xf32, #tpu.memory_space<vmem>>, vector<2x4x16xf32>
    %cst = arith.constant dense<0xFF800000> : vector<2x4xf32>
    %1 = vector.multi_reduction <maximumf>, %0, %cst [2] : vector<2x4x16xf32> to vector<2x4xf32>
    %2 = vector.shape_cast %1 : vector<2x4xf32> to vector<2x4x1xf32>
    %cst_2 = arith.constant 1.000000e-07 : f32
    %3 = vector.broadcast %cst_2 : f32 to vector<2x4x1xf32>
    %4 = arith.mulf %2, %3 : vector<2x4x1xf32>
    %cst_3 = arith.constant 9.99999996E-13 : f32
    %5 = vector.broadcast %cst_3 : f32 to vector<2x4x1xf32>
    %6 = arith.maximumf %4, %5 : vector<2x4x1xf32>
    %7 = vector.broadcast %6 : vector<2x4x1xf32> to vector<2x4x16xf32>
    %8 = arith.maximumf %0, %7 : vector<2x4x16xf32>
    %9 = math.log %8 : vector<2x4x16xf32>
    %10 = arith.divf %9, %8 : vector<2x4x16xf32>
    %11 = arith.mulf %10, %10 : vector<2x4x16xf32>
    %cst_4 = arith.constant dense<0.000000e+00> : vector<2x4xf32>
    %12 = vector.multi_reduction <add>, %11, %cst_4 [2] : vector<2x4x16xf32> to vector<2x4xf32>
    %c0_5 = arith.constant 0 : index
    %c0_6 = arith.constant 0 : index
    %13 = vector.load %arg1[%c0_5, %c0_6] : memref<2x4xf32, #tpu.memory_space<vmem>>, vector<2x4xf32>
    tpu.vector_store %arg1[%c0_5, %c0_6], %12 {strides = array<i32>} : memref<2x4xf32, #tpu.memory_space<vmem>>, vector<2x4xf32>,
    return
  }
}

</mosaic_0001>

<bundles_post_ra>
// kernel: custom-call.5
= control target key start
LH: loop header
LB: loop body
LE: loop exit
PB: predicated region body
PF: predicated region fallthrough
CT: control target
= control target key end

     0   :  { %s1724_s30 = smov 0   ;;  %s1726_s10 = smov 0   ;;  %s2054_s0 = inlined_call_operand.vmem [shape: f32[2,8,8], index: 0, kind: input, shape index: {}]   ;;  %s2055_s1 = inlined_call_operand.vmem [shape: f32[2,8,8], index: 1, kind: input, shape index: {}]   ;;  %s2056_s2 = inlined_call_operand.vmem [shape: f32[2,8,8], index: 2, kind: input, shape index: {}]   ;;  %s2057_s3 = inlined_call_operand.vmem [shape: f32[2,8,8], index: 3, kind: input, shape index: {}]   ;;  %s2058_s4 = inlined_call_operand.vmem [shape: f32[2,8], index: 4, kind: output, shape index: {0}]   ;;  %s2059_s5 = inlined_call_operand.vmem [shape: f32[2,8], index: 5, kind: output, shape index: {1}]   ;;  %s2060_s6 = inlined_call_operand.vmem [shape: f32[2,8,8], index: 6, kind: output, shape index: {2}]   ;;  %s2061_s7 = inlined_call_operand.vmem [shape: f32[2,8,8], index: 7, kind: output, shape index: {3}]   ;;  %s2062_s8 = inlined_call_operand.vmem [shape: f32[2,8,8], index: 8, kind: output, shape index: {4}]   ;;  %s2063_s9 = inlined_call_operand.vmem [shape: f32[2,8,8], index: 9, kind: output, shape index: {5}]  }
   0x1   :  { %s1728_s11 = smov 0  }
   0x2 LB: > { %s1740_s12 = sadd.s32 4294967295, %s1661_s11   ;;  %s1743_s13 = sadd.s32 1, %s1661_s11   ;;  %s1661_s11 = sphi %s1728_s11, %s2070_s11   ;;  %s1657_s10 = sphi %s1726_s10, %s2069_s10   ;;  %s1653_s30 = sphi %s1724_s30, %s2068_s30  }
   0x3   : > { %s20_s14 = sshrl.u32 %s1661_s11, 3  ;;  %s21_s15 = sshrl.u32 %s1743_s13, 3 }
   0x4   : > { %s22_s16 = ssub.s32 %s20_s14, %s21_s15  ;;  %s25_s17 = sadd.s32 1, %s1657_s10 }
   0x5   : > { %p23_p0 = scmp.eq.s32.totalorder %s22_s16, 0  ;;  %p35_p1 = scmp.ne.s32.totalorder %s1657_s10, %s1653_s30 }
   0x6   : > { %p36_p2 = scmp.eq.s32.totalorder %s1740_s12, 1  ;;  %p1522_p4 = scmp.ge.s32.totalorder %s1661_s11, 2 }
   0x7   : > { %s1752_s18 = scalar_select %p23_p0, %s1657_s10, %s25_s17  }
   0x8   : > { %p1754_p3 = por %p36_p2, %p35_p1  ;;  %86 = sbr.rel (%p1522_p4) target bundleno = 18 (0x12), region = 16 }
   0x9   : > { %2064 = sst [smem:[#allocation25_spill]] %s1752_s18  ;;  %s88_s20 = sand.u32 (!%p1522_p4), 1, %s1661_s11  }
   0xa   : > { %s1524_s21 = sshll.u32 (!%p1522_p4), %s1661_s11, 3  ;;  %s1523_s22 = sshll.u32 (!%p1522_p4), %s88_s20, 3 }
   0xb   : > { %s92_s25 = scalar_lea.vmem (!%p1522_p4), %s2054_s0, %s1524_s21  ;;  %s90_s26 = scalar_lea.vmem (!%p1522_p4), [#allocation0], %s1523_s22 }
   0xc   : > { %s131_s29 = scalar_lea.vmem (!%p1522_p4), %s2055_s1, %s1524_s21  ;;  %s170_s16 = scalar_lea.vmem (!%p1522_p4), %s2056_s2, %s1524_s21 }
   0xd   : > { %v121_v0 = vld [vmem:[%s92_s25] sm:$0xff]  ;;  %s129_s17 = scalar_lea.vmem [#allocation1], %s1523_s22  ;;  %s209_s23 = scalar_lea.vmem %s2057_s3, %s1524_s21 }
   0xe   : > { %122 = vst [vmem:[%s90_s26] sm:$0xff] %v121_v0  ;;  %v160_v1 = vld [vmem:[%s131_s29] sm:$0xff]  ;;  %s168_s24 = scalar_lea.vmem [#allocation2], %s1523_s22  ;;  %s207_s25 = scalar_lea.vmem [#allocation3], %s1523_s22 }
   0xf   : > { %161 = vst [vmem:[%s129_s17] sm:$0xff] %v160_v1  ;;  %v199_v2 = vld [vmem:[%s170_s16] sm:$0xff] }
  0x10   : > { %200 = vst [vmem:[%s168_s24] sm:$0xff] %v199_v2  ;;  %v238_v3 = vld [vmem:[%s209_s23] sm:$0xff] }
  0x11   : > { %239 = vst [vmem:[%s207_s25] sm:$0xff] %v238_v3 }
  0x12 PF: > { %p1531_p5 = scmp.ge.s32.totalorder %s1661_s11, 1  ;;  %p244_p6 = scmp.lt.s32.totalorder %s1661_s11, 3 }
  0x14   : > { %p245_p7 = pnand %p1531_p5, %p244_p6 }
  0x16   : > { %248 = sbr.rel (%p245_p7) target bundleno = 946 (0x3b2), region = 156 }
  0x1b   : > { %s251_s26 = sand.u32 1, %s1740_s12   ;;  %s285_s27 = sand.u32 1, %s1653_s30   ;;  %v329_v4 = vlaneseq  ;;  %v1671_v9 = vmov 0.0  }
  0x1c   : > { %s1777_s28 = sshll.u32 %s251_s26, 3  ;;  %s1779_s18 = sshll.u32 %s285_s27, 1 }
  0x1d   : > { %v1781_v5 = vand.u32 127, %v329_v4  ;;  %v1783_v6 = vshrl.u32 %v329_v4, 7  ;;  %s253_s11 = scalar_lea.vmem [#allocation0], %s1777_s28  ;;  %s257_s21 = scalar_lea.vmem [#allocation1], %s1777_s28 }
  0x1e   : > { %v313_v7 = vld [vmem:[%s253_s11] sm:$0xff]  ;;  %v316_v8 = vld [vmem:[%s257_s21] sm:$0xff]  ;;  %s1788_s30 = scalar_lea.vmem [#allocation8], %s1777_s28  ;;  %s312_s22 = smov [#allocation12] }
  0x1f   : > { %324 = vst [vmem:[%s1788_s30] sm:$0xff] %v1671_v9  ;;  %s315_s29 = smov [#allocation13]  ;;  %s261_s14 = scalar_lea.vmem [#allocation2], %s1777_s28  ;;  %v331_v5 = vmov %v1781_v5  ;;  %v334_v6 = vmov %v1783_v6  ;;  %vm1411_vm2 = vcmp.lt.s32.totalorder %v1781_v5, 8 }
  0x20   : > { %v319_v10 = vld [vmem:[%s261_s14] sm:$0xff]  ;;  %s1793_s15 = scalar_lea.vmem [#allocation9], %s1777_s28  ;;  %314 = vst [vmem:[%s312_s22] sm:$0xff] %v313_v7  ;;  %s318_s16 = smov [#allocation14]  ;;  %vm338_vm0 = vcmp.eq.s32.totalorder %v334_v6, %v331_v5  ;;  %v344_v5 = vmov %v1781_v5  ;;  %v347_v6 = vmov %v1783_v6 }
  0x21   : > { %325 = vst [vmem:[%s1793_s15] sm:$0xff] %v1671_v9  ;;  %s321_s17 = smov [#allocation15]  ;;  %s265_s20 = scalar_lea.vmem [#allocation3], %s1777_s28  ;;  %vm351_vm1 = vcmp.eq.s32.totalorder %v347_v6, %v344_v5  ;;  %v1403_v5 = vmov %v1781_v5  ;;  %v1406_v6 = vmov %v1783_v6 }
  0x22   : > { %v322_v11 = vld [vmem:[%s265_s20] sm:$0xff]  ;;  %317 = vst [vmem:[%s315_s29] sm:$0xff] %v316_v8  ;;  %s328_s30 = smov %s1788_s30  ;;  %s1801_s23 = scalar_lea.vmem [#allocation10], %s1777_s28  ;;  %v1420_v5 = vmov %v1781_v5  ;;  %v1423_v6 = vmov %v1783_v6  ;;  %vm1416_vm3 = vcmp.eq.s32.totalorder %v1406_v6, %v1403_v5 }
  0x23   : > { %320 = vst [vmem:[%s318_s16] sm:$0xff] %v319_v10  ;;  %s1805_s24 = scalar_lea.vmem [#allocation11], %s1777_s28  ;;  %s287_s25 = scalar_lea.vmem [#allocation5], %s1779_s18  ;;  %v1437_v5 = vmov %v1781_v5  ;;  %v1440_v6 = vmov %v1783_v6 }
  0x24   : > { %323 = vst [vmem:[%s321_s17] sm:$0xff] %v322_v11  ;;  %s293_s26 = scalar_lea.vmem [#allocation7], %s1779_s18  ;;  %s1407_s27 = smov [#allocation12]  ;;  %v1454_v5 = vmov %v1781_v5  ;;  %v1457_v6 = vmov %v1783_v6 }
  0x25   : > { %326 = vst [vmem:[%s1801_s23] sm:$0xff] %v1671_v9  ;;  %s1424_s28 = smov [#allocation13]  ;;  %s1441_s11 = smov [#allocation14]  ;;  %vm1467_vm4 = vcmp.eq.s32.totalorder %v1457_v6, %v1454_v5 }
  0x26   : > { %327 = vst [vmem:[%s1805_s24] sm:$0xff] %v1671_v9  ;;  %v335_v12 = vld [vmem:[%s328_s30] sm:$0xff]  ;;  %s341_s24 = smov %s1805_s24  ;;  %s1458_s21 = smov [#allocation15] }
  0x27   : > { %v339_v13 = vsel %vm338_vm0, 1.0, %v335_v12  ;;  %v1413_v16 = vld [vmem:[%s1407_s27] sm:$0xff] }
  0x28   : > { %340 = vst [vmem:[%s328_s30] sm:$0xff] %v339_v13  ;;  %v1414_v18 = vsel %vm1411_vm2, %v1413_v16, 0.0 }
  0x29   : > { %v1430_v17 = vld [vmem:[%s1424_s28] sm:$0xff]  ;;  %v1415_v22 = vmul.f32 %v1414_v18, %v1414_v18 }
  0x2a   : > { %v1431_v19 = vsel %vm1411_vm2, %v1430_v17, 0.0  ;;  %v1447_v20 = vld [vmem:[%s1441_s11] sm:$0xff] }
  0x2b   : > { %v1464_v21 = vld [vmem:[%s1458_s21] sm:$0xff]  ;;  %v1432_v23 = vmul.f32 %v1431_v19, %v1431_v19  ;;  %v1448_v24 = vsel %vm1411_vm2, %v1447_v20, 0.0  ;;  %v1417_v29 = vsel %vm1416_vm3, 0.0, %v1415_v22 }
  0x2c   : > { %v1465_v25 = vsel %vm1411_vm2, %v1464_v21, 0.0  ;;  %v1449_v26 = vmul.f32 %v1448_v24, %v1448_v24 }
  0x2d   : > { %v348_v14 = vld [vmem:[%s341_s24] sm:$0xff]  ;;  %v1434_v27 = vadd.f32 %v1432_v23, %v1415_v22  ;;  %v1466_v28 = vmul.f32 %v1465_v25, %v1465_v25  ;;  %v1433_v31 = vadd.f32 %v1432_v23, %v1417_v29 }
  0x2e   : > { %v352_v15 = vsel %vm351_vm1, 1.0, %v348_v14 }
  0x2f   : > { %353 = vst [vmem:[%s341_s24] sm:$0xff] %v352_v15  ;;  %v1451_v30 = vadd.f32 %v1449_v26, %v1434_v27  ;;  %v1450_v33 = vadd.f32 %v1449_v26, %v1433_v31  ;;  %v1468_v34 = vsel %vm1467_vm4, 0.0, %v1466_v28 }
  0x31   : > { %v1470_v32 = vadd.f32 %v1466_v28, %v1451_v30  ;;  %v1469_v35 = vadd.f32 %v1468_v34, %v1450_v33 }
  0x33   : > { %1471 = vadd.xlane.f32.xlu0 %v1470_v32 }
  0x3b   : > { %1479 = vadd.xlane.f32.xlu0 %v1469_v35 }
  0xa6   : > { %v1472_v36 = vpop.xlane.xlu0 %1471 }
  0xa7   : > { %v1473_v37 = vrot.slane %v1472_v36, 4 }
  0xa9   : > { %v1474_v38 = vadd.f32 %v1473_v37, %v1472_v36 }
  0xab   : > { %v1475_v39 = vrot.slane %v1474_v38, 2 }
  0xad   : > { %v1476_v43 = vadd.f32 %v1475_v39, %v1474_v38 }
  0xae   : > { %v1480_v40 = vpop.xlane.xlu0 %1479 }
  0xaf   : > { %v1481_v41 = vrot.slane %v1480_v40, 4  ;;  %v1477_v46 = vrot.slane %v1476_v43, 1 }
  0xb1   : > { %v1482_v42 = vadd.f32 %v1481_v41, %v1480_v40  ;;  %v1478_v49 = vadd.f32 %v1477_v46, %v1476_v43 }
  0xb3   : > { %v1483_v44 = vrot.slane %v1482_v42, 2 }
  0xb5   : > { %v1484_v45 = vadd.f32 %v1483_v44, %v1482_v42 }
  0xb7   : > { %v1485_v47 = vrot.slane %v1484_v45, 1 }
  0xb9   : > { %v1486_v48 = vadd.f32 %v1485_v47, %v1484_v45 }
  0xbb   : > { %1572 = vpush %v1486_v48 }
  0xbc   : > { %1574 = vpush %v1478_v49 }
  0xec   : > { %s1573_s22 = spop %1572 }
  0xed   : > { %s1575_s29 = spop %1574 }
  0xee   : > { %s1489_s14 = smul.f32 1e-10, %s1575_s29 }
  0xf0   : > { %p1490_p8 = scmp.le.f32.partialorder %s1573_s22, %s1489_s14 }
  0xf1   : > { %s1830_s16 = smov (!%p1490_p8), 0  }
  0xf2   : > { %1493 = sbr.rel (%p1490_p8) target bundleno = 900 (0x384), region = 499 }
  0xf7 LB: >> { %s1835_s17 = smov 0   ;;  %s1665_s16 = sphi %s1830_s16, %s2066_s16  }
  0xf8 LB: >>> { %s458_s20 = smov [#allocation12]  ;;  %v462_v5 = vmov %v1781_v5  ;;  %v465_v6 = vmov %v1783_v6  ;;  %s478_s27 = smov [#allocation13]  ;;  %s1669_s17 = sphi %s1835_s17, %s457_s17  }
  0xf9   : >>> { %v482_v5 = vmov %v1781_v5  ;;  %v485_v6 = vmov %v1783_v6  ;;  %v466_v50 = vld [vmem:[%s458_s20] sm:$0xff]  ;;  %vm469_vm5 = vcmp.eq.s32.totalorder %v465_v6, %v462_v5  ;;  %s498_s28 = smov [#allocation15]  ;;  %s459_s11 = smov [#allocation16] }
  0xfa   : >>> { %vm489_vm6 = vcmp.eq.s32.totalorder %v485_v6, %v482_v5  ;;  %v502_v5 = vmov %v1781_v5  ;;  %v505_v6 = vmov %v1783_v6  ;;  %v470_v51 = vsel %vm469_vm5, %v466_v50, 0.0  ;;  %v486_v52 = vld [vmem:[%s478_s27] sm:$0xff]  ;;  %s479_s21 = smov [#allocation17]  ;;  %s499_s22 = smov [#allocation18] }
  0xfb   : >>> { %vm509_vm7 = vcmp.eq.s32.totalorder %v505_v6, %v502_v5  ;;  %v471_v53 = vrot.slane %v470_v51, 4  ;;  %v490_v54 = vsel %vm489_vm6, %v486_v52, 0.0  ;;  %v506_v55 = vld [vmem:[%s498_s28] sm:$0xff]  ;;  %s522_s29 = smov [#allocation17]  ;;  %s520_s14 = smov [#allocation16]  ;;  %v611_v5 = vmov %v1781_v5 }
  0xfc   : >>> { %v491_v56 = vrot.slane %v490_v54, 4  ;;  %v510_v57 = vsel %vm509_vm7, %v506_v55, 0.0  ;;  %s524_s20 = smov [#allocation18]  ;;  %s599_s27 = smov [#allocation19]  ;;  %v614_v6 = vmov %v1783_v6 }
  0xfd   : >>> { %v472_v58 = vadd.f32 %v471_v53, %v470_v51  ;;  %v511_v59 = vrot.slane %v510_v57, 4  ;;  %s601_s28 = smov [#allocation20]  ;;  %s1862_s30 = smov %s1788_s30 }
  0xfe   : >>> { %v492_v60 = vadd.f32 %v491_v56, %v490_v54  ;;  %s1865_s15 = smov %s1793_s15  ;;  %s1870_s23 = smov %s1801_s23 }
  0xff   : >>> { %v473_v61 = vrot.slane %v472_v58, 2  ;;  %v512_v62 = vadd.f32 %v511_v59, %v510_v57  ;;  %s1875_s24 = smov %s1805_s24  ;;  %s457_s17 = sadd.s32 1, %s1669_s17  }
 0x100   : >>> { %v493_v63 = vrot.slane %v492_v60, 2  ;;  %p454_p9 = scmp.ge.s32.totalorder %s457_s17, 15  }
 0x101   : >>> { %v474_v0 = vadd.f32 %v473_v61, %v472_v58  ;;  %v513_v1 = vrot.slane %v512_v62, 2 }
 0x102   : >>> { %v494_v2 = vadd.f32 %v493_v63, %v492_v60 }
 0x103   : >>> { %v475_v3 = vrot.slane %v474_v0, 1  ;;  %v514_v4 = vadd.f32 %v513_v1, %v512_v62 }
 0x104   : >>> { %v495_v7 = vrot.slane %v494_v2, 1 }
 0x105   : >>> { %v476_v8 = vadd.f32 %v475_v3, %v474_v0  ;;  %v515_v9 = vrot.slane %v514_v4, 1 }
 0x106   : >>> { %v496_v10 = vadd.f32 %v495_v7, %v494_v2 }
 0x107   : >>> { %477 = vst [vmem:[%s459_s11] sm:$0x1] %v476_v8  ;;  %v516_v11 = vadd.f32 %v515_v9, %v514_v4  ;;  %s518_s11 = smov [#allocation21] }
 0x108   : >>> { %497 = vst [vmem:[%s479_s21] sm:$0x1] %v496_v10  ;;  %s519_s21 = smov [#allocation22]  ;;  %s603_s11 = smov %s518_s11 }
 0x109   : >>> { %517 = vst [vmem:[%s499_s22] sm:$0x1] %v516_v11  ;;  %s605_s21 = smov %s519_s21  ;;  %s607_s22 = smov [#allocation21] }
 0x10e   : >>> { %v521_v19 = vld [vmem:[%s520_s14] sm:$0xff]  ;;  %s620_s14 = smov [#allocation23] }
 0x10f   : >>> { %v1846_v12 = vld [vmem:[%s522_s29] sm:$0xff]  ;;  %v575_v43 = vand.u32 2147483647, %v521_v19  ;;  %s622_s29 = smov [#allocation22] }
 0x110   : >>> { %v527_v13 = vmul.f32 2.0, %v1846_v12  ;;  %v525_v20 = vld [vmem:[%s524_s20] sm:$0xff]  ;;  %v576_v51 = vand.u32 2147483647, %v1846_v12  ;;  %s635_s20 = smov [#allocation24] }
 0x111   : >>> { %v526_v23 = vsub.f32 %v525_v20, %v521_v19  ;;  %v577_v44 = vand.u32 2147483647, %v525_v20 }
 0x112   : >>> { %1623 = vrcp.f32 %v527_v13  ;;  %v539_v16 = vand.u32 2147483648, %v527_v13  ;;  %vm533_vm8 = vweird.f32 %v527_v13  ;;  %v537_v18 = vand.u32 2147483647, %v527_v13 }
 0x113   : >>> { %v578_v46 = vmin.f32 %v575_v43, %v577_v44 }
 0x114   : >>> { %v540_v22 = vor.u32 1.1754944e-38, %v539_v16  ;;  %vm538_vm11 = vcmp.eq.f32.partialorder %v537_v18, 8.507059e+37 }
 0x115   : >>> { %v579_v52 = vmul.f32 1.1920929e-08, %v578_v46 }
 0x117   : >>> { %vm580_vm4 = vcmp.le.f32.partialorder %v576_v51, %v579_v52 }
 0x118   : >>> { %v1624_v14 = vpop.eup %1623 }
 0x119   : >>> { %v529_v15 = vmul.f32 %v1624_v14, %v527_v13  ;;  %vm534_vm9 = vweird.f32 %v1624_v14 }
 0x11a   : >>> { %vm535_vm10 = vmor %vm533_vm8, %vm534_vm9  ;;  %vm616_vm8 = vcmp.eq.s32.totalorder %v614_v6, %v611_v5  ;;  %v626_v5 = vmov %v1781_v5  ;;  %v629_v6 = vmov %v1783_v6 }
 0x11b   : >>> { %v530_v17 = vsub.f32 1.0, %v529_v15  ;;  %vm631_vm9 = vcmp.eq.s32.totalorder %v629_v6, %v626_v5  ;;  %v697_v5 = vmov %v1781_v5 }
 0x11c   : >>> { %v738_v5 = vmov %v1781_v5 }
 0x11d   : >>> { %v531_v21 = vmul.f32 %v1624_v14, %v530_v17  ;;  %v724_v5 = vmov %v1781_v5 }
 0x11f   : >>> { %v532_v24 = vadd.f32 %v1624_v14, %v531_v21 }
 0x121   : >>> { %v536_v25 = vsel %vm535_vm10, %v1624_v14, %v532_v24  ;;  %v871_v24 = vld [vmem:[%s1870_s23] sm:$0xff]  ;;  %vm821_vm10 = vcmp.eq.s32.totalorder %v1783_v6, 0 }
 0x122   : >>> { %v541_v26 = vsel %vm538_vm11, %v540_v22, %v536_v25  ;;  %vm833_vm11 = vcmp.eq.s32.totalorder %v1783_v6, 7  ;;  %v700_v6 = vmov %v1783_v6 }
 0x123   : >>> { %v542_v27 = vmul.f32 %v541_v26, %v526_v23  ;;  %v741_v6 = vmov %v1783_v6 }
 0x124   : >>> { %v727_v6 = vmov %v1783_v6 }
 0x125   : >>> { %v544_v28 = vmul.f32 %v542_v27, %v542_v27  ;;  %vm543_vm14 = vcmp.ge.f32.partialorder %v542_v27, 0.0 }
 0x127   : >>> { %v545_v29 = vadd.f32 1.0, %v544_v28 }
 0x129   : >>> { %1625 = vrsqrt.f32 %v545_v29  ;;  %vm553_vm12 = vcmp.eq.f32.partialorder %v545_v29, inf  ;;  %v556_v36 = vand.u32 2147483648, %v545_v29  ;;  %vm555_vm13 = vcmp.eq.f32.partialorder %v545_v29, 0.0 }
 0x12f   : >>> { %v1626_v30 = vpop.eup %1625 }
 0x130   : >>> { %v547_v31 = vmul.f32 %v1626_v30, %v545_v29 }
 0x132   : >>> { %v548_v32 = vmul.f32 %v1626_v30, %v547_v31 }
 0x134   : >>> { %v549_v33 = vmul.f32 0.5, %v548_v32 }
 0x136   : >>> { %v550_v34 = vsub.f32 1.5, %v549_v33 }
 0x138   : >>> { %v551_v35 = vmul.f32 %v1626_v30, %v550_v34 }
 0x13a   : >>> { %v552_v37 = vmul.f32 %v551_v35, %v545_v29 }
 0x13c   : >>> { %v554_v38 = vsel %vm553_vm12, %v545_v29, %v552_v37  ;;  %v872_v29 = vld [vmem:[%s1875_s24] sm:$0xff]  ;;  %vm705_vm12 = vcmp.eq.s32.totalorder %v700_v6, %v697_v5  ;;  %v711_v5 = vmov %v1781_v5  ;;  %v714_v6 = vmov %v1783_v6 }
 0x13d   : >>> { %v557_v39 = vsel %vm555_vm13, %v556_v36, %v554_v38  ;;  %vm746_vm13 = vcmp.eq.s32.totalorder %v741_v6, %v738_v5 }
 0x13e   : >>> { %v558_v40 = vxor.u32 2147483648, %v557_v39 }
 0x140   : >>> { %v559_v41 = vsel %vm543_vm14, %v557_v39, %v558_v40  ;;  %vm731_vm14 = vcmp.eq.s32.totalorder %v727_v6, %v724_v5 }
 0x141   : >>> { %v560_v42 = vadd.f32 %v559_v41, %v542_v27 }
 0x143   : >>> { %1627 = vrcp.f32 %v560_v42  ;;  %v572_v48 = vand.u32 2147483648, %v560_v42  ;;  %vm566_vm15 = vweird.f32 %v560_v42  ;;  %v570_v50 = vand.u32 2147483647, %v560_v42 }
 0x145   : >>> { %v573_v54 = vor.u32 1.1754944e-38, %v572_v48  ;;  %vm571_vm3 = vcmp.eq.f32.partialorder %v570_v50, 8.507059e+37 }
 0x149   : >>> { %v1628_v45 = vpop.eup %1627 }
 0x14a   : >>> { %v562_v47 = vmul.f32 %v1628_v45, %v560_v42  ;;  %vm567_vm0 = vweird.f32 %v1628_v45 }
 0x14b   : >>> { %vm568_vm1 = vmor %vm566_vm15, %vm567_vm0  ;;  %vm718_vm15 = vcmp.eq.s32.totalorder %v714_v6, %v711_v5  ;;  %vm777_vm0 = vcmp.eq.s32.totalorder %v1781_v5, 7  ;;  %v361_v6 = vmov (%p454_p9), %v1783_v6 }
 0x14c   : >>> { %v563_v49 = vsub.f32 1.0, %v562_v47 }
 0x14e   : >>> { %v564_v53 = vmul.f32 %v1628_v45, %v563_v49 }
 0x150   : >>> { %v565_v55 = vadd.f32 %v1628_v45, %v564_v53 }
 0x152   : >>> { %v569_v56 = vsel %vm568_vm1, %v1628_v45, %v565_v55  ;;  %vm760_vm1 = vcmp.eq.s32.totalorder %v1781_v5, 0 }
 0x153   : >>> { %v574_v57 = vsel %vm571_vm3, %v573_v54, %v569_v56  ;;  %vm764_vm3 = vcmp.eq.s32.totalorder %v1781_v5, 1  ;;  %v358_v5 = vmov (%p454_p9), %v1781_v5 }
 0x154   : >>> { %v581_v58 = vsel %vm580_vm4, 0.0, %v574_v57  ;;  %vm373_vm4 = vcmp.eq.s32.totalorder (%p454_p9), %v361_v6, %v358_v5  ;;  %v377_v5 = vmov (%p454_p9), %v1781_v5  ;;  %v380_v6 = vmov (%p454_p9), %v1783_v6 }
 0x155   : >>> { %v582_v59 = vmul.f32 %v581_v58, %v581_v58  ;;  %v595_v60 = vmul.f32 %v581_v58, %v1846_v12  ;;  %v394_v5 = vmov (%p454_p9), %v1781_v5  ;;  %v397_v6 = vmov (%p454_p9), %v1783_v6 }
 0x156   : >> { %v411_v5 = vmov (%p454_p9), %v1781_v5  ;;  %v414_v6 = vmov (%p454_p9), %v1783_v6 }
 0x157   : >>> { %v583_v61 = vadd.f32 1.0, %v582_v59  ;;  %v596_v62 = vsub.f32 %v521_v19, %v595_v60  ;;  %v598_v63 = vadd.f32 %v595_v60, %v525_v20  ;;  %v869_v19 = vld [vmem:[%s1862_s30] sm:$0xff] }
 0x158   : >>> { %v870_v20 = vld [vmem:[%s1865_s15] sm:$0xff] }
 0x159   : >>> { %1629 = vrsqrt.f32 %v583_v61  ;;  %600 = vst [vmem:[%s599_s27] sm:$0xff] %v596_v62  ;;  %vm590_vm5 = vweird.f32 %v583_v61  ;;  %s637_s27 = smov [#allocation23] }
 0x15a   : >>> { %602 = vst [vmem:[%s601_s28] sm:$0xff] %v598_v63  ;;  %s1855_s28 = smov [#allocation12] }
 0x15b   : >>> { %v645_v22 = vld [vmem:[%s1855_s28] sm:$0xff] }
 0x15f   : >>> { %v1630_v0 = vpop.eup %1629 }
 0x160   : >>> { %v585_v1 = vmul.f32 %v1630_v0, %v583_v61  ;;  %vm591_vm6 = vweird.f32 %v1630_v0 }
 0x161   : >>> { %vm592_vm7 = vmor %vm590_vm5, %vm591_vm6  ;;  %vm426_vm5 = vcmp.eq.s32.totalorder (%p454_p9), %v414_v6, %v411_v5 }
 0x162   : >>> { %v586_v2 = vmul.f32 %v1630_v0, %v585_v1 }
 0x164   : >>> { %v587_v3 = vmul.f32 0.5, %v586_v2 }
 0x166   : >>> { %v588_v4 = vsub.f32 1.5, %v587_v3 }
 0x168   : >>> { %v589_v7 = vmul.f32 %v1630_v0, %v588_v4 }
 0x16a   : >>> { %v593_v8 = vsel %vm592_vm7, %v1630_v0, %v589_v7 }
 0x16b   : >>> { %604 = vst [vmem:[%s603_s11] sm:$0xff] %v593_v8  ;;  %v594_v9 = vmul.f32 %v593_v8, %v581_v58  ;;  %s1857_s11 = smov [#allocation13] }
 0x16c   : >>> { %v646_v16 = vld [vmem:[%s1857_s11] sm:$0xff] }
 0x16d   : >>> { %606 = vst [vmem:[%s605_s21] sm:$0xff] %v594_v9  ;;  %s1859_s21 = smov [#allocation14] }
 0x16e   : >>> { %v647_v17 = vld [vmem:[%s1859_s21] sm:$0xff] }
 0x172   : >>> { %v608_v10 = vld [vmem:[%s607_s22] ss:$0 sm:$0xff]  ;;  %s861_s22 = smov [#allocation23] }
 0x173   : >>> { %v617_v11 = vsel %vm616_vm8, %v608_v10, 0.0 }
 0x174   : >>> { %618 = vadd.xlane.f32.xlu0 %v617_v11  ;;  %v623_v12 = vld [vmem:[%s622_s29] ss:$0 sm:$0xff]  ;;  %s1867_s29 = smov [#allocation15] }
 0x175   : >>> { %v632_v13 = vsel %vm631_vm9, %v623_v12, 0.0  ;;  %v648_v23 = vld [vmem:[%s1867_s29] sm:$0xff] }
 0x17c   : >>> { %633 = vadd.xlane.f32.xlu0 %v632_v13 }
 0x1e7   : >>> { %v619_v14 = vpop.xlane.xlu0 %618 }
 0x1e8   : >>> { %621 = vst [vmem:[%s620_s14] sm:$0xff] %v619_v14  ;;  %s639_s14 = smov [#allocation24] }
 0x1ef   : >>> { %v634_v15 = vpop.xlane.xlu0 %633  ;;  %v638_v18 = vld [vmem:[%s637_s27] sm:$0xff]  ;;  %s665_s27 = smov [#allocation21] }
 0x1f0   : >>> { %636 = vst [vmem:[%s635_s20] sm:$0xff] %v634_v15  ;;  %s863_s20 = smov [#allocation24]  ;;  %v862_v21 = vld [vmem:[%s861_s22] sm:$0xff]  ;;  %v652_v25 = vmul.f32 %v646_v16, %v638_v18  ;;  %v656_v26 = vmul.f32 %v647_v17, %v638_v18  ;;  %v649_v46 = vmul.f32 %v645_v22, %v638_v18  ;;  %v659_v48 = vmul.f32 %v648_v23, %v638_v18  ;;  %s667_s22 = smov [#allocation22] }
 0x1f1   : >>> { %v873_v30 = vmul.f32 %v869_v19, %v862_v21  ;;  %v876_v31 = vmul.f32 %v870_v20, %v862_v21  ;;  %v880_v38 = vmul.f32 %v871_v24, %v862_v21  ;;  %v883_v42 = vmul.f32 %v872_v29, %v862_v21  ;;  %v666_v52 = vld [vmem:[%s665_s27] ss:$0 sm:$0xff]  ;;  %s693_s27 = smov [#allocation12] }
 0x1f2   : >>> { %v668_v53 = vld [vmem:[%s667_s22] ss:$0 sm:$0xff]  ;;  %s734_s22 = smov [#allocation15] }
 0x1f7   : >>> { %v640_v27 = vld [vmem:[%s639_s14] sm:$0xff]  ;;  %s1889_s14 = smov [#allocation14] }
 0x1f8   : >>> { %v864_v28 = vld [vmem:[%s863_s20] sm:$0xff]  ;;  %v653_v32 = vmul.f32 %v648_v23, %v640_v27  ;;  %v655_v33 = vmul.f32 %v645_v22, %v640_v27  ;;  %v650_v39 = vmul.f32 %v647_v17, %v640_v27  ;;  %v658_v43 = vmul.f32 %v646_v16, %v640_v27  ;;  %s735_s20 = smov [#allocation20] }
 0x1f9   : >>> { %v874_v34 = vmul.f32 %v871_v24, %v864_v28  ;;  %v877_v35 = vmul.f32 %v872_v29, %v864_v28  ;;  %v879_v36 = vmul.f32 %v869_v19, %v864_v28  ;;  %v882_v37 = vmul.f32 %v870_v20, %v864_v28  ;;  %v742_v23 = vld [vmem:[%s735_s20] ss:$0 sm:$0xff]  ;;  %s1672_s20 = smov 1  }
 0x1fa   : >>> { %v654_v40 = vsub.f32 %v652_v25, %v653_v32  ;;  %v657_v41 = vadd.f32 %v656_v26, %v655_v33  ;;  %v651_v50 = vsub.f32 %v649_v46, %v650_v39  ;;  %v660_v51 = vadd.f32 %v659_v48, %v658_v43 }
 0x1fb   : >>> { %v875_v44 = vsub.f32 %v873_v30, %v874_v34  ;;  %v878_v45 = vsub.f32 %v876_v31, %v877_v35  ;;  %v881_v47 = vadd.f32 %v880_v38, %v879_v36  ;;  %v884_v49 = vadd.f32 %v883_v42, %v882_v37 }
 0x1fc   : >>> { %662 = vst [vmem:[%s1857_s11] sm:$0xff] %v654_v40  ;;  %s1891_s11 = smov [#allocation13] }
 0x1fd   : >>> { %663 = vst [vmem:[%s1859_s21] sm:$0xff] %v657_v41  ;;  %s1903_s21 = smov [#allocation12] }
 0x1fe   : >>> { %885 = vst [vmem:[%s1862_s30] sm:$0xff] %v875_v44  ;;  %s889_s30 = smov %s1788_s30 }
 0x1ff   : >>> { %886 = vst [vmem:[%s1865_s15] sm:$0xff] %v878_v45  ;;  %s1897_s15 = smov %s1793_s15 }
 0x200   : >>> { %887 = vst [vmem:[%s1870_s23] sm:$0xff] %v881_v47  ;;  %s890_s23 = smov %s1801_s23 }
 0x201   : >>> { %888 = vst [vmem:[%s1875_s24] sm:$0xff] %v884_v49  ;;  %s1907_s24 = smov %s1805_s24 }
 0x202   : >>> { %661 = vst [vmem:[%s1855_s28] sm:$0xff] %v651_v50  ;;  %s672_s28 = smov [#allocation15] }
 0x203   : >>> { %664 = vst [vmem:[%s1867_s29] sm:$0xff] %v660_v51  ;;  %v674_v55 = vld [vmem:[%s1891_s11] sm:$0xff]  ;;  %s694_s29 = smov [#allocation19] }
 0x204   : >>> { %v675_v54 = vld [vmem:[%s1889_s14] sm:$0xff]  ;;  %v678_v4 = vmul.f32 %v674_v55, %v668_v53  ;;  %v681_v12 = vmul.f32 %v674_v55, %v666_v52 }
 0x205   : >>> { %v891_v56 = vld [vmem:[%s889_s30] ss:$0 sm:$0xff]  ;;  %v1551_v58 = vld [vmem:[%s889_s30 + $0x7] ss:$0 sm:$0xff]  ;;  %v686_v9 = vmul.f32 %v675_v54, %v668_v53  ;;  %v683_v10 = vmul.f32 %v675_v54, %v666_v52 }
 0x206   : >>> { %v1550_v57 = vld [vmem:[%s889_s30 - $0x1] sm:$0xfe]  ;;  %v1555_v62 = vld [vmem:[%s1897_s15 + $0x7] ss:$0 sm:$0xff] }
 0x207   : >>> { %v898_v59 = vsel %vm821_vm10, %v891_v56, %v1550_v57  ;;  %v915_v60 = vld [vmem:[%s1897_s15] ss:$0 sm:$0xff]  ;;  %v1553_v0 = vld [vmem:[%s890_s23 + $0x1] sm:$0x7f] }
 0x208   : >>> { %v1554_v61 = vld [vmem:[%s1897_s15 - $0x1] sm:$0xfe]  ;;  %901 = vst [vmem:[%s889_s30] sm:$0xff] %v898_v59  ;;  %v910_v2 = vsel %vm833_vm11, %v1551_v58, %v1553_v0 }
 0x209   : >>> { %v902_v63 = vld [vmem:[%s890_s23] ss:$0 sm:$0xff]  ;;  %v922_v1 = vsel %vm821_vm10, %v915_v60, %v1554_v61  ;;  %v1557_v3 = vld [vmem:[%s1907_s24 + $0x1] sm:$0x7f] }
 0x20a   : >>> { %1552 = vst [vmem:[%s889_s30 + $0x1] sm:$0x1] %v902_v63  ;;  %v926_v7 = vld [vmem:[%s1907_s24] ss:$0 sm:$0xff]  ;;  %v934_v8 = vsel %vm833_vm11, %v1555_v62, %v1557_v3 }
 0x20b   : >>> { %912 = vst [vmem:[%s890_s23] sm:$0xff] %v910_v2  ;;  %v673_v11 = vld [vmem:[%s1903_s21] sm:$0xff] }
 0x20c   : >>> { %925 = vst [vmem:[%s1897_s15] sm:$0xff] %v922_v1  ;;  %v676_v13 = vld [vmem:[%s672_s28] sm:$0xff]  ;;  %v677_v14 = vmul.f32 %v673_v11, %v666_v52  ;;  %v680_v15 = vmul.f32 %v673_v11, %v668_v53 }
 0x20d   : >>> { %1556 = vst [vmem:[%s1897_s15 + $0x1] sm:$0x1] %v926_v7  ;;  %v684_v16 = vmul.f32 %v676_v13, %v668_v53  ;;  %v687_v17 = vmul.f32 %v676_v13, %v666_v52  ;;  %v701_v22 = vld [vmem:[%s694_s29] ss:$0 sm:$0xff]  ;;  %s1941_s29 = smov [#allocation14] }
 0x20e   : >>> { %936 = vst [vmem:[%s1907_s24] sm:$0xff] %v934_v8  ;;  %v679_v18 = vsub.f32 %v677_v14, %v678_v4  ;;  %v682_v21 = vadd.f32 %v681_v12, %v680_v15 }
 0x20f   : >>> { %v688_v19 = vadd.f32 %v687_v17, %v686_v9  ;;  %v685_v20 = vsub.f32 %v683_v10, %v684_v16 }
 0x210   : >>> { %689 = vst [vmem:[%s1903_s21] sm:$0xff] %v679_v18  ;;  %s708_s21 = smov [#allocation13] }
 0x211   : >>> { %692 = vst [vmem:[%s672_s28] sm:$0xff] %v688_v19  ;;  %s1939_s28 = smov [#allocation15] }
 0x212   : >>> { %691 = vst [vmem:[%s1889_s14] sm:$0xff] %v685_v20  ;;  %s721_s14 = smov [#allocation14] }
 0x213   : >>> { %690 = vst [vmem:[%s1891_s11] sm:$0xff] %v682_v21  ;;  %s1937_s11 = smov [#allocation12] }
 0x217   : >>> { %v702_v24 = vld [vmem:[%s693_s27] sm:$0xff] }
 0x218   : >>> { %v743_v25 = vld [vmem:[%s734_s22] sm:$0xff]  ;;  %v706_v26 = vsel %vm705_vm12, %v701_v22, %v702_v24 }
 0x219   : >>> { %v747_v27 = vsel %vm746_vm13, %v742_v23, %v743_v25  ;;  %v728_v28 = vld [vmem:[%s721_s14] sm:$0xff]  ;;  %707 = vst [vmem:[%s693_s27] sm:$0xff] %v706_v26  ;;  %s750_s27 = smov [#allocation13] }
 0x21a   : >>> { %748 = vst [vmem:[%s734_s22] sm:$0xff] %v747_v27  ;;  %v732_v29 = vsel %vm731_vm14, 0.0, %v728_v28  ;;  %v715_v30 = vld [vmem:[%s708_s21] sm:$0xff]  ;;  %s1673_s22 = smov 127  }
 0x21b   : >>> { %733 = vst [vmem:[%s721_s14] sm:$0xff] %v732_v29  ;;  %v719_v31 = vsel %vm718_vm15, 0.0, %v715_v30  ;;  %s1949_s14 = smov [#allocation13] }
 0x21c   : >>> { %720 = vst [vmem:[%s708_s21] sm:$0xff] %v719_v31  ;;  %s814_s21 = smov [#allocation14] }
 0x220   : >>> { %v755_v32 = vld [vmem:[%s1937_s11] sm:$0xff] }
 0x221   : >>> { %v783_v33 = vld [vmem:[%s1939_s28] sm:$0xff]  ;;  %756 = vrot.lane.b32.xlu1 %v755_v32, %s1672_s20 }
 0x222   : >>> { %784 = vrot.lane.b32.xlu0 %v783_v33, %s1672_s20  ;;  %v787_v34 = vld [vmem:[%s1941_s29] sm:$0xff] }
 0x223   : >>> { %788 = vrot.lane.b32.xlu2 %v787_v34, %s1672_s20  ;;  %v772_v35 = vld [vmem:[%s750_s27] sm:$0xff] }
 0x229   : >>> { %752 = vrot.lane.b32.xlu1 %v772_v35, %s1672_s20  ;;  %s813_s20 = smov [#allocation12] }
 0x22b   : >>> { %773 = vrot.lane.b32.xlu2 %v772_v35, %s1673_s22 }
 0x231   : >>> { %805 = vrot.lane.b32.xlu1 %v783_v33, %s1673_s22  ;;  %s398_s22 = smov (%p454_p9), [#allocation14] }
 0x27d   : >>> { %v789_v36 = vpop.permute.xlu2 %788 }
 0x27e   : >>> { %v793_v44 = vsel %vm760_vm1, %v787_v34, %v789_v36 }
 0x285   : >>> { %v774_v37 = vpop.permute.xlu2 %773 }
 0x286   : >>> { %v778_v38 = vsel %vm777_vm0, %v755_v32, %v774_v37 }
 0x287   : >>> { %780 = vst [vmem:[%s750_s27] sm:$0xff] %v778_v38  ;;  %s381_s27 = smov (%p454_p9), [#allocation13] }
 0x28e   : >>> { %v839_v39 = vld [vmem:[%s1949_s14] ss:$0 sm:$0xff]  ;;  %v1547_v41 = vld [vmem:[%s1949_s14 + $0x7] ss:$0 sm:$0xff] }
 0x28f   : >>> { %v1546_v40 = vld [vmem:[%s1949_s14 - $0x1] sm:$0xfe] }
 0x290   : >>> { %v846_v42 = vsel %vm821_vm10, %v839_v39, %v1546_v40 }
 0x291   : >>> { %849 = vst [vmem:[%s1949_s14] sm:$0xff] %v846_v42 }
 0x293   : >>> { %v757_v43 = vpop.permute.xlu1 %756 }
 0x294   : >>> { %v785_v45 = vpop.permute.xlu0 %784  ;;  %v761_v48 = vsel %vm760_vm1, %v755_v32, %v757_v43 }
 0x295   : >>> { %v797_v46 = vsel %vm764_vm3, %v785_v45, %v793_v44 }
 0x296   : >>> { %v803_v47 = vsel %vm1411_vm2, %v797_v46, 0.0 }
 0x297   : >>> { %811 = vst [vmem:[%s1941_s29] sm:$0xff] %v803_v47  ;;  %s362_s29 = smov (%p454_p9), [#allocation12] }
 0x29b   : >>> { %v753_v49 = vpop.permute.xlu1 %752 }
 0x29c   : >>> { %v765_v50 = vsel %vm764_vm3, %v753_v49, %v761_v48 }
 0x29d   : >>> { %v771_v51 = vsel %vm1411_vm2, %v765_v50, 0.0 }
 0x29e   : >>> { %779 = vst [vmem:[%s1937_s11] sm:$0xff] %v771_v51  ;;  %v1545_v53 = vld [vmem:[%s814_s21 + $0x1] sm:$0x7f]  ;;  %v826_v60 = vld [vmem:[%s814_s21] ss:$0 sm:$0xff]  ;;  %s838_s11 = smov [#allocation15] }
 0x2a3   : >>> { %v806_v52 = vpop.permute.xlu1 %805 }
 0x2a4   : >>> { %v810_v54 = vsel %vm777_vm0, %v787_v34, %v806_v52 }
 0x2a5   : >>> { %v815_v55 = vld [vmem:[%s813_s20] ss:$0 sm:$0xff]  ;;  %v1543_v57 = vld [vmem:[%s813_s20 + $0x7] ss:$0 sm:$0xff]  ;;  %812 = vst [vmem:[%s1939_s28] sm:$0xff] %v810_v54  ;;  %s937_s28 = sadd.s32 (%p454_p9), 1, %s1665_s16  }
 0x2a6   : >>> { %v1542_v56 = vld [vmem:[%s813_s20 - $0x1] sm:$0xfe]  ;;  %v834_v59 = vsel %vm833_vm11, %v1543_v57, %v1545_v53  ;;  %p450_p10 = scmp.ge.s32.totalorder (%p454_p9), %s937_s28, 15  ;;  %s2066_s16 = smov (%p454_p9), %s937_s28 }
 0x2a7   : >>> { %v822_v58 = vsel %vm821_vm10, %v815_v55, %v1542_v56  ;;  %836 = vst [vmem:[%s814_s21] sm:$0xff] %v834_v59 }
 0x2a8   : >>> { %825 = vst [vmem:[%s813_s20] sm:$0xff] %v822_v58 }
 0x2a9   : >>> { %1544 = vst [vmem:[%s813_s20 + $0x1] sm:$0x1] %v826_v60 }
 0x2ac   : >>> { %v850_v61 = vld [vmem:[%s838_s11] ss:$0 sm:$0xff]  ;;  %v1549_v62 = vld [vmem:[%s838_s11 + $0x1] sm:$0x7f] }
 0x2ad   : >>> { %1548 = vst [vmem:[%s1949_s14 + $0x1] sm:$0x1] %v850_v61  ;;  %v858_v63 = vsel %vm833_vm11, %v1547_v41, %v1549_v62  ;;  %456 = sbr.rel (!%p454_p9) target bundleno = 248 (0xf8), region = 494  ;;  %s415_s14 = smov (%p454_p9), [#allocation15] }
 0x2ae   : >>> { %860 = vst [vmem:[%s838_s11] sm:$0xff] %v858_v63  ;;  %v404_v4 = vld [vmem:[%s398_s22] sm:$0xff] (%p454_p9) }
 0x2af   : >> { %v405_v10 = vsel (%p454_p9), %vm1411_vm2, %v404_v4, 0.0 }
 0x2b0   : >> { %v368_v0 = vld [vmem:[%s362_s29] sm:$0xff] (%p454_p9)  ;;  %v406_v12 = vmul.f32 (%p454_p9), %v405_v10, %v405_v10 }
 0x2b1   : >> { %v369_v2 = vsel (%p454_p9), %vm1411_vm2, %v368_v0, 0.0 }
 0x2b2   : >> { %v370_v8 = vmul.f32 %v369_v2, %v369_v2 }
 0x2b4   : >> { %v387_v1 = vld [vmem:[%s381_s27] sm:$0xff]  ;;  %v374_v15 = vsel %vm373_vm4, 0.0, %v370_v8 }
 0x2b5   : >> { %v388_v3 = vsel %vm1411_vm2, %v387_v1, 0.0  ;;  %v421_v7 = vld [vmem:[%s415_s14] sm:$0xff] }
 0x2b6   : >> { %v389_v9 = vmul.f32 %v388_v3, %v388_v3  ;;  %v422_v11 = vsel %vm1411_vm2, %v421_v7, 0.0 }
 0x2b7   : >> { %v423_v14 = vmul.f32 %v422_v11, %v422_v11 }
 0x2b8   : >> { %v391_v13 = vadd.f32 %v389_v9, %v370_v8  ;;  %v390_v17 = vadd.f32 %v389_v9, %v374_v15 }
 0x2b9   : >> { %v427_v20 = vsel %vm426_vm5, 0.0, %v423_v14 }
 0x2ba   : >> { %v408_v16 = vadd.f32 %v406_v12, %v391_v13  ;;  %v407_v19 = vadd.f32 %v406_v12, %v390_v17 }
 0x2bc   : >> { %v429_v18 = vadd.f32 %v423_v14, %v408_v16  ;;  %v428_v21 = vadd.f32 %v427_v20, %v407_v19 }
 0x2be   : >> { %430 = vadd.xlane.f32.xlu0 %v429_v18 }
 0x2c6   : >> { %438 = vadd.xlane.f32.xlu0 %v428_v21 }
 0x331   : >> { %v431_v22 = vpop.xlane.xlu0 %430 }
 0x332   : >> { %v432_v23 = vrot.slane %v431_v22, 4 }
 0x334   : >> { %v433_v24 = vadd.f32 %v432_v23, %v431_v22 }
 0x336   : >> { %v434_v25 = vrot.slane %v433_v24, 2 }
 0x338   : >> { %v435_v29 = vadd.f32 %v434_v25, %v433_v24 }
 0x339   : >> { %v439_v26 = vpop.xlane.xlu0 %438 }
 0x33a   : >> { %v440_v27 = vrot.slane %v439_v26, 4  ;;  %v436_v32 = vrot.slane %v435_v29, 1 }
 0x33c   : >> { %v441_v28 = vadd.f32 %v440_v27, %v439_v26  ;;  %v437_v35 = vadd.f32 %v436_v32, %v435_v29 }
 0x33e   : >> { %v442_v30 = vrot.slane %v441_v28, 2 }
 0x340   : >> { %v443_v31 = vadd.f32 %v442_v30, %v441_v28 }
 0x342   : >> { %v444_v33 = vrot.slane %v443_v31, 1 }
 0x344   : >> { %v445_v34 = vadd.f32 %v444_v33, %v443_v31 }
 0x346   : >> { %1576 = vpush %v445_v34 }
 0x347   : >> { %1578 = vpush %v437_v35 }
 0x377   : >> { %s1577_s17 = spop %1576 }
 0x378   : >> { %s1579_s21 = spop %1578 }
 0x379   : >> { %s448_s20 = smul.f32 1e-10, %s1579_s21 }
 0x37b   : >> { %p449_p11 = scmp.le.f32.partialorder %s1577_s17, %s448_s20 }
 0x37d   : >> { %p451_p12 = por %p450_p10, %p449_p11 }
 0x37f   : > { %939 = sbr.rel (!%p451_p12) target bundleno = 247 (0xf7), region = 505 }
 0x384 PF: > { %s944_s11 = smov [#allocation12]  ;;  %v948_v5 = vmov %v1781_v5  ;;  %v951_v6 = vmov %v1783_v6  ;;  %s964_s29 = smov [#allocation15] }
 0x385   : > { %v968_v5 = vmov %v1781_v5  ;;  %v971_v6 = vmov %v1783_v6  ;;  %v952_v36 = vld [vmem:[%s944_s11] sm:$0xff]  ;;  %vm955_vm6 = vcmp.eq.s32.totalorder %v951_v6, %v948_v5  ;;  %s940_s16 = sand.u32 7, %s1740_s12   ;;  %s1023_s22 = sshrl.u32 (%p1754_p3), %s1740_s12, 3 }
 0x386   : > { %vm975_vm7 = vcmp.eq.s32.totalorder %v971_v6, %v968_v5  ;;  %v956_v37 = vsel %vm955_vm6, %v952_v36, 0.0  ;;  %v972_v39 = vld [vmem:[%s964_s29] sm:$0xff]  ;;  %s941_s28 = scalar_lea.vmem [#allocation4], %s940_s16  ;;  %s943_s27 = scalar_lea.vmem [#allocation6], %s940_s16 }
 0x387   : > { %v957_v38 = vrot.slane %v956_v37, 4  ;;  %v976_v40 = vsel %vm975_vm7, %v972_v39, 0.0  ;;  %s945_s28 = smov %s941_s28  ;;  %s965_s27 = smov %s943_s27 }
 0x388   : > { %v977_v42 = vrot.slane %v976_v40, 4  ;;  %s1564_s14 = sshll.u32 (%p1754_p3), %s1023_s22, 1 }
 0x389   : > { %v958_v41 = vadd.f32 %v957_v38, %v956_v37  ;;  %s1025_s20 = scalar_lea.vmem (%p1754_p3), %s2058_s4, %s1564_s14 }
 0x38a   : > { %v978_v44 = vadd.f32 %v977_v42, %v976_v40 }
 0x38b   : > { %v959_v43 = vrot.slane %v958_v41, 2 }
 0x38c   : > { %v979_v46 = vrot.slane %v978_v44, 2 }
 0x38d   : > { %v960_v45 = vadd.f32 %v959_v43, %v958_v41 }
 0x38e   : > { %v980_v48 = vadd.f32 %v979_v46, %v978_v44 }
 0x38f   : > { %v961_v47 = vrot.slane %v960_v45, 1 }
 0x390   : > { %v981_v5 = vrot.slane %v980_v48, 1 }
 0x391   : > { %v962_v49 = vadd.f32 %v961_v47, %v960_v45 }
 0x392   : > { %v982_v6 = vadd.f32 %v981_v5, %v980_v48 }
 0x393   : > { %963 = vst [vmem:[%s945_s28] sm:$0x1] %v962_v49 }
 0x394   : > { %983 = vst [vmem:[%s965_s27] sm:$0x1] %v982_v6 }
 0x398   : > { %1022 = sbr.rel (!%p1754_p3) target bundleno = 932 (0x3a4), region = 174 }
 0x39a   : > { %v986_v50 = vld [vmem:[#allocation4] sm:$0x3] }
 0x39b   : > { %989 = vst [vmem:[%s287_s25] sm:$0x3] %v986_v50  ;;  %v992_v51 = vld [vmem:[#allocation6] sm:$0x3] }
 0x39c   : > { %995 = vst [vmem:[%s293_s26] sm:$0x3] %v992_v51 }
 0x3a2   : > { %v1042_v52 = vld [vmem:[%s287_s25] sm:$0x3] }
 0x3a3   : > { %1043 = vst [vmem:[%s1025_s20] sm:$0x3] %v1042_v52 }
 0x3a4 PF: > { %1061 = sbr.rel (!%p1754_p3) target bundleno = 940 (0x3ac), region = 208  ;;  %s1062_s11 = sshrl.u32 (%p1754_p3), %s1740_s12, 3 }
 0x3a5   : > { %s1565_s29 = sshll.u32 (%p1754_p3), %s1062_s11, 1 }
 0x3a6   : > { %s1064_s25 = scalar_lea.vmem (%p1754_p3), %s2059_s5, %s1565_s29 }
 0x3aa   : > { %v1081_v53 = vld [vmem:[%s293_s26] sm:$0x3] }
 0x3ab   : > { %1082 = vst [vmem:[%s1064_s25] sm:$0x3] %v1081_v53 }
 0x3ac PF: > { %s1566_s27 = sshll.u32 %s1740_s12, 3  ;;  %v1128_v54 = vld [vmem:[%s1788_s30] sm:$0xff]  ;;  %v1163_v55 = vld [vmem:[%s1793_s15] sm:$0xff] }
 0x3ad   : > { %s1099_s18 = scalar_lea.vmem %s2060_s6, %s1566_s27  ;;  %s1134_s17 = scalar_lea.vmem %s2061_s7, %s1566_s27  ;;  %v1198_v56 = vld [vmem:[%s1801_s23] sm:$0xff]  ;;  %v1233_v57 = vld [vmem:[%s1805_s24] sm:$0xff] }
 0x3ae   : > { %1129 = vst [vmem:[%s1099_s18] sm:$0xff] %v1128_v54  ;;  %s1169_s11 = scalar_lea.vmem %s2062_s8, %s1566_s27  ;;  %s1204_s12 = scalar_lea.vmem %s2063_s9, %s1566_s27 }
 0x3af   : > { %1164 = vst [vmem:[%s1134_s17] sm:$0xff] %v1163_v55 }
 0x3b0   : > { %1199 = vst [vmem:[%s1169_s11] sm:$0xff] %v1198_v56 }
 0x3b1   : > { %1234 = vst [vmem:[%s1204_s12] sm:$0xff] %v1233_v57 }
 0x3b2 PF: > { %s2067_s15 = sld [smem:[#allocation25_spill]]  ;;  %p13_p13 = scmp.ge.s32.totalorder %s1743_s13, 4  }
 0x3b3   : > { %s2068_s30 = smov %s1657_s10  ;;  %s2070_s11 = smov %s1743_s13 }
 0x3b4   :  { %15 = sbr.rel (!%p13_p13) target bundleno = 2 (0x2), region = 516 }
 0x3b8   : > { %s2069_s10 = smov %s2067_s15 }

// kernel: custom-call.6
= control target key start
LH: loop header
LB: loop body
LE: loop exit
PB: predicated region body
PF: predicated region fallthrough
CT: control target
= control target key end

     0   :  { %s2330_s0 = inlined_call_operand.vmem [shape: f32[2,4,8,8], index: 0, kind: input, shape index: {}]   ;;  %s2331_s1 = inlined_call_operand.vmem [shape: f32[2,4,8,8], index: 1, kind: input, shape index: {}]   ;;  %s2332_s2 = inlined_call_operand.vmem [shape: f32[2,4,8,8], index: 2, kind: input, shape index: {}]   ;;  %s2333_s3 = inlined_call_operand.vmem [shape: f32[2,4,8,8], index: 3, kind: input, shape index: {}]   ;;  %s2334_s4 = inlined_call_operand.vmem [shape: f32[2,4,8], index: 4, kind: output, shape index: {0}]   ;;  %s2335_s5 = inlined_call_operand.vmem [shape: f32[2,4,8], index: 5, kind: output, shape index: {1}]   ;;  %s2336_s6 = inlined_call_operand.hbm [shape: f32[2,4,8,8], index: 6, kind: output, shape index: {2}]   ;;  %s2337_s7 = inlined_call_operand.hbm [shape: f32[2,4,8,8], index: 7, kind: output, shape index: {3}]   ;;  %s2338_s8 = inlined_call_operand.hbm [shape: f32[2,4,8,8], index: 8, kind: output, shape index: {4}]   ;;  %s2339_s9 = inlined_call_operand.hbm [shape: f32[2,4,8,8], index: 9, kind: output, shape index: {5}]  }
   0x1   :  { %2346 = sst [smem:[#allocation36_spill]] %s2330_s0 }
   0x2   :  { %2347 = sst [smem:[#allocation37_spill]] %s2339_s9 }
   0x3   :  { %11 = vsyncpa [#allocation9], 0 }
   0x4   :  { %13 = vsyncpa [#allocation9 + $0x1], 0 }
   0x5   :  { %14 = vsyncpa [#allocation11], 0 }
   0x6   :  { %16 = vsyncpa [#allocation11 + $0x1], 0 }
   0x7   :  { %17 = vsyncpa [#allocation14], 0 }
   0x8   :  { %19 = vsyncpa [#allocation14 + $0x1], 0  ;;  %s1911_s30 = smov 0   ;;  %s1913_s10 = smov 0  }
   0x9   :  { %s1915_s11 = smov 0   ;;  %s1917_s12 = smov 0  }
   0xa   :  { %s1919_s13 = smov 0   ;;  %s1921_s14 = smov 0  }
   0xb   :  { %s1923_s15 = smov 0  }
   0xc LB: > { %2348 = sst [smem:[#allocation31_spill]] %s1828_s10  ;;  %s2340_s17 = sadd.s32 4294967295, %s1848_s15   ;;  %s1848_s15 = sphi %s1923_s15, %s25_s15   ;;  %s1844_s14 = sphi %s1921_s14, %s2370_s14   ;;  %s1840_s13 = sphi %s1919_s13, %s2372_s13   ;;  %s1836_s12 = sphi %s1917_s12, %s2368_s12   ;;  %s1832_s11 = sphi %s1915_s11, %s2371_s11   ;;  %s1828_s10 = sphi %s1913_s10, %s2367_s10   ;;  %s1824_s30 = sphi %s1911_s30, %s2366_s30  }
   0xd   : > { %2349 = sst [smem:[#allocation32_spill]] %s1844_s14  ;;  %s34_s18 = sadd.s32 1, %s1840_s13 }
   0xe   : > { %p35_p0 = scmp.ge.s32.totalorder %s34_s18, 4  ;;  %s37_s19 = sadd.s32 1, %s1844_s14 }
   0xf   : > { %s41_s20 = sshrl.u32 %s1840_s13, 3  ;;  %p58_p1 = scmp.ne.s32.totalorder %s1828_s10, %s1824_s30 }
  0x10   : > { %s2374_s18 = smov (%p35_p0, %s34_s18), 0  ;;  %s2376_s19 = smov (!%p35_p0, %s37_s19), %s1844_s14 }
  0x11   : > { %2350 = sst [smem:[#allocation33_spill]] %s2374_s18  ;;  %s42_s21 = sshrl.u32 %s2374_s18, 3 }
  0x12   : > { %p59_p2 = scmp.eq.s32.totalorder %s2340_s17, 7  ;;  %p39_p3 = scmp.ge.s32.totalorder %s2376_s19, 2 }
  0x13   : > { %s44_s22 = ssub.s32 %s41_s20, %s42_s21  ;;  %s48_s26 = sadd.s32 1, %s1828_s10 }
  0x14   : > { %p1959_p4 = por %p59_p2, %p58_p1  ;;  %s2378_s19 = smov (%p39_p3, %s2376_s19), 0 }
  0x15   : > { %2352 = sst [smem:[#allocation34_spill]] %s2378_s19  ;;  %s43_s24 = ssub.s32 %s1844_s14, %s2378_s19 }
  0x16   : > { %s45_s25 = sor.u32 %s44_s22, %s43_s24  ;;  %p1524_p6 = scmp.ge.s32.totalorder %s1848_s15, 8 }
  0x17   : > { %p46_p5 = scmp.eq.s32.totalorder %s45_s25, 0  ;;  %s113_s28 = sand.u32 (!%p1524_p6), 1, %s1848_s15  }
  0x18   : > { %111 = sbr.rel (%p1524_p6) target bundleno = 38 (0x26), region = 16  ;;  %s1526_s29 = sshll.u32 (!%p1524_p6), %s1844_s14, 2 }
  0x19   : > { %s1969_s27 = scalar_select %p46_p5, %s1828_s10, %s48_s26  }
  0x1a   : > { %s1525_s20 = sshll.u32 (!%p1524_p6), %s113_s28, 3  ;;  %s117_s21 = sadd.s32 (!%p1524_p6), %s1840_s13, %s1526_s29 }
  0x1b   : > { %2353 = sst [smem:[#allocation35_spill]] %s1969_s27  ;;  %s1527_s16 = sshll.u32 (!%p1524_p6), %s117_s21, 3 }
  0x1c   : > { %s2354_s0 = sld [smem:[#allocation36_spill]] (!%p1524_p6)  ;;  %s160_s25 = scalar_lea.vmem (!%p1524_p6), %s2331_s1, %s1527_s16 }
  0x1d   : > { %s115_s26 = scalar_lea.vmem [#allocation0], %s1525_s20  ;;  %v189_v1 = vld [vmem:[%s160_s25] sm:$0xff]  ;;  %s201_s9 = scalar_lea.vmem %s2332_s2, %s1527_s16 }
  0x1e   : > { %s156_s14 = scalar_lea.vmem [#allocation1], %s1525_s20  ;;  %v230_v2 = vld [vmem:[%s201_s9] sm:$0xff]  ;;  %s242_s17 = scalar_lea.vmem %s2333_s3, %s1527_s16 }
  0x1f   : > { %190 = vst [vmem:[%s156_s14] sm:$0xff] %v189_v1  ;;  %s197_s18 = scalar_lea.vmem [#allocation2], %s1525_s20  ;;  %v271_v3 = vld [vmem:[%s242_s17] sm:$0xff] }
  0x20   : > { %231 = vst [vmem:[%s197_s18] sm:$0xff] %v230_v2 }
  0x22   : > { %s119_s19 = scalar_lea.vmem %s2354_s0, %s1527_s16 }
  0x23   : > { %v148_v0 = vld [vmem:[%s119_s19] sm:$0xff]  ;;  %s238_s19 = scalar_lea.vmem [#allocation3], %s1525_s20 }
  0x24   : > { %149 = vst [vmem:[%s115_s26] sm:$0xff] %v148_v0 }
  0x25   : > { %272 = vst [vmem:[%s238_s19] sm:$0xff] %v271_v3 }
  0x26 PF: > { %p1537_p7 = scmp.ge.s32.totalorder %s1848_s15, 1  ;;  %p277_p8 = scmp.lt.s32.totalorder %s1848_s15, 9 }
  0x28   : > { %p278_p9 = pnand %p1537_p7, %p277_p8 }
  0x2a   : > { %281 = sbr.rel (%p278_p9) target bundleno = 1017 (0x3f9), region = 156 }
  0x2f   : > { %s2355_s10 = sadd.s32 4294967295, %s1848_s15   ;;  %s318_s14 = sand.u32 1, %s1824_s30   ;;  %v366_v4 = vlaneseq  ;;  %v1858_v9 = vmov 0.0  }
  0x30   : > { %s1991_s9 = sand.u32 1, %s2355_s10   ;;  %s1997_s27 = sshll.u32 %s318_s14, 2 }
  0x31   : > { %s1995_s16 = sshll.u32 %s1991_s9, 3  ;;  %v1999_v5 = vand.u32 127, %v366_v4  ;;  %v2001_v6 = vshrl.u32 %v366_v4, 7  ;;  %s349_s22 = smov [#allocation15] }
  0x32   : > { %s286_s20 = scalar_lea.vmem [#allocation0], %s1995_s16  ;;  %s290_s21 = scalar_lea.vmem [#allocation1], %s1995_s16 }
  0x33   : > { %v350_v7 = vld [vmem:[%s286_s20] sm:$0xff]  ;;  %v353_v8 = vld [vmem:[%s290_s21] sm:$0xff]  ;;  %s2006_s30 = scalar_lea.vmem [#allocation8], %s1995_s16  ;;  %s352_s24 = smov [#allocation16]  ;;  %v368_v5 = vmov %v1999_v5  ;;  %v371_v6 = vmov %v2001_v6  ;;  %vm1401_vm2 = vcmp.lt.s32.totalorder %v1999_v5, 8 }
  0x34   : > { %361 = vst [vmem:[%s2006_s30] sm:$0xff] %v1858_v9  ;;  %s294_s25 = scalar_lea.vmem [#allocation2], %s1995_s16  ;;  %s2011_s26 = scalar_lea.vmem [#allocation10], %s1995_s16  ;;  %vm375_vm0 = vcmp.eq.s32.totalorder %v371_v6, %v368_v5  ;;  %v381_v5 = vmov %v1999_v5  ;;  %v384_v6 = vmov %v2001_v6 }
  0x35   : > { %v356_v10 = vld [vmem:[%s294_s25] sm:$0xff]  ;;  %362 = vst [vmem:[%s2011_s26] sm:$0xff] %v1858_v9  ;;  %s355_s28 = smov [#allocation17]  ;;  %s358_s29 = smov [#allocation18]  ;;  %vm388_vm1 = vcmp.eq.s32.totalorder %v384_v6, %v381_v5  ;;  %v1393_v5 = vmov %v1999_v5  ;;  %v1396_v6 = vmov %v2001_v6 }
  0x36   : > { %351 = vst [vmem:[%s349_s22] sm:$0xff] %v350_v7  ;;  %s298_s17 = scalar_lea.vmem [#allocation3], %s1995_s16  ;;  %s365_s30 = smov %s2006_s30  ;;  %v1410_v5 = vmov %v1999_v5  ;;  %v1413_v6 = vmov %v2001_v6  ;;  %vm1406_vm3 = vcmp.eq.s32.totalorder %v1396_v6, %v1393_v5 }
  0x37   : > { %v359_v11 = vld [vmem:[%s298_s17] sm:$0xff]  ;;  %354 = vst [vmem:[%s352_s24] sm:$0xff] %v353_v8  ;;  %s2019_s18 = scalar_lea.vmem [#allocation12], %s1995_s16  ;;  %s2023_s19 = scalar_lea.vmem [#allocation13], %s1995_s16  ;;  %v1427_v5 = vmov %v1999_v5  ;;  %v1430_v6 = vmov %v2001_v6 }
  0x38   : > { %357 = vst [vmem:[%s355_s28] sm:$0xff] %v356_v10  ;;  %s320_s10 = scalar_lea.vmem [#allocation5], %s1997_s27  ;;  %s1397_s20 = smov [#allocation15]  ;;  %v1444_v5 = vmov %v1999_v5  ;;  %v1447_v6 = vmov %v2001_v6 }
  0x39   : > { %360 = vst [vmem:[%s358_s29] sm:$0xff] %v359_v11  ;;  %s1414_s16 = smov [#allocation16]  ;;  %s1431_s21 = smov [#allocation17]  ;;  %vm1457_vm4 = vcmp.eq.s32.totalorder %v1447_v6, %v1444_v5 }
  0x3a   : > { %363 = vst [vmem:[%s2019_s18] sm:$0xff] %v1858_v9  ;;  %s1448_s22 = smov [#allocation18] }
  0x3b   : > { %364 = vst [vmem:[%s2023_s19] sm:$0xff] %v1858_v9  ;;  %v372_v12 = vld [vmem:[%s365_s30] sm:$0xff]  ;;  %s378_s19 = smov %s2023_s19 }
  0x3c   : > { %v376_v13 = vsel %vm375_vm0, 1.0, %v372_v12 }
  0x3d   : > { %377 = vst [vmem:[%s365_s30] sm:$0xff] %v376_v13  ;;  %v1403_v16 = vld [vmem:[%s1397_s20] sm:$0xff] }
  0x3e   : > { %v1420_v17 = vld [vmem:[%s1414_s16] sm:$0xff]  ;;  %v1404_v18 = vsel %vm1401_vm2, %v1403_v16, 0.0 }
  0x3f   : > { %v1421_v19 = vsel %vm1401_vm2, %v1420_v17, 0.0  ;;  %v1437_v20 = vld [vmem:[%s1431_s21] sm:$0xff]  ;;  %v1405_v22 = vmul.f32 %v1404_v18, %v1404_v18 }
  0x40   : > { %v1454_v21 = vld [vmem:[%s1448_s22] sm:$0xff]  ;;  %v1422_v23 = vmul.f32 %v1421_v19, %v1421_v19  ;;  %v1438_v24 = vsel %vm1401_vm2, %v1437_v20, 0.0 }
  0x41   : > { %v1455_v25 = vsel %vm1401_vm2, %v1454_v21, 0.0  ;;  %v1439_v26 = vmul.f32 %v1438_v24, %v1438_v24  ;;  %v1407_v29 = vsel %vm1406_vm3, 0.0, %v1405_v22 }
  0x42   : > { %v385_v14 = vld [vmem:[%s378_s19] sm:$0xff]  ;;  %v1424_v27 = vadd.f32 %v1422_v23, %v1405_v22  ;;  %v1456_v28 = vmul.f32 %v1455_v25, %v1455_v25  ;;  %v1423_v31 = vadd.f32 %v1422_v23, %v1407_v29 }
  0x43   : > { %v389_v15 = vsel %vm388_vm1, 1.0, %v385_v14 }
  0x44   : > { %390 = vst [vmem:[%s378_s19] sm:$0xff] %v389_v15  ;;  %v1441_v30 = vadd.f32 %v1439_v26, %v1424_v27  ;;  %v1440_v33 = vadd.f32 %v1439_v26, %v1423_v31  ;;  %v1458_v34 = vsel %vm1457_vm4, 0.0, %v1456_v28 }
  0x46   : > { %v1460_v32 = vadd.f32 %v1456_v28, %v1441_v30  ;;  %v1459_v35 = vadd.f32 %v1458_v34, %v1440_v33 }
  0x48   : > { %1461 = vadd.xlane.f32.xlu0 %v1460_v32 }
  0x50   : > { %1469 = vadd.xlane.f32.xlu0 %v1459_v35 }
  0xbb   : > { %v1462_v36 = vpop.xlane.xlu0 %1461 }
  0xbc   : > { %v1463_v37 = vrot.slane %v1462_v36, 4 }
  0xbe   : > { %v1464_v38 = vadd.f32 %v1463_v37, %v1462_v36 }
  0xc0   : > { %v1465_v39 = vrot.slane %v1464_v38, 2 }
  0xc2   : > { %v1466_v43 = vadd.f32 %v1465_v39, %v1464_v38 }
  0xc3   : > { %v1470_v40 = vpop.xlane.xlu0 %1469 }
  0xc4   : > { %v1471_v41 = vrot.slane %v1470_v40, 4  ;;  %v1467_v46 = vrot.slane %v1466_v43, 1 }
  0xc6   : > { %v1472_v42 = vadd.f32 %v1471_v41, %v1470_v40  ;;  %v1468_v49 = vadd.f32 %v1467_v46, %v1466_v43 }
  0xc8   : > { %v1473_v44 = vrot.slane %v1472_v42, 2 }
  0xca   : > { %v1474_v45 = vadd.f32 %v1473_v44, %v1472_v42 }
  0xcc   : > { %v1475_v47 = vrot.slane %v1474_v45, 1 }
  0xce   : > { %v1476_v48 = vadd.f32 %v1475_v47, %v1474_v45 }
  0xd0   : > { %1582 = vpush %v1476_v48 }
  0xd1   : > { %1584 = vpush %v1468_v49 }
 0x101   : > { %s1583_s24 = spop %1582 }
 0x102   : > { %s1585_s25 = spop %1584 }
 0x103   : > { %s1479_s28 = smul.f32 1e-10, %s1585_s25 }
 0x105   : > { %p1480_p10 = scmp.le.f32.partialorder %s1583_s24, %s1479_s28 }
 0x106   : > { %s2048_s29 = smov (!%p1480_p10), 0  }
 0x107   : > { %1483 = sbr.rel (%p1480_p10) target bundleno = 921 (0x399), region = 365 }
 0x10c LB: >> { %s2053_s17 = smov 0   ;;  %s1852_s29 = sphi %s2048_s29, %s2356_s29  }
 0x10d LB: >>> { %s495_s20 = smov [#allocation15]  ;;  %v499_v5 = vmov %v1999_v5  ;;  %v502_v6 = vmov %v2001_v6  ;;  %s515_s16 = smov [#allocation16]  ;;  %s1856_s17 = sphi %s2053_s17, %s494_s17  }
 0x10e   : >>> { %v519_v5 = vmov %v1999_v5  ;;  %v522_v6 = vmov %v2001_v6  ;;  %v503_v50 = vld [vmem:[%s495_s20] sm:$0xff]  ;;  %vm506_vm5 = vcmp.eq.s32.totalorder %v502_v6, %v499_v5  ;;  %s535_s21 = smov [#allocation18]  ;;  %s496_s22 = smov [#allocation19] }
 0x10f   : >>> { %vm526_vm6 = vcmp.eq.s32.totalorder %v522_v6, %v519_v5  ;;  %v539_v5 = vmov %v1999_v5  ;;  %v542_v6 = vmov %v2001_v6  ;;  %v507_v51 = vsel %vm506_vm5, %v503_v50, 0.0  ;;  %v523_v52 = vld [vmem:[%s515_s16] sm:$0xff]  ;;  %s516_s24 = smov [#allocation20]  ;;  %s536_s25 = smov [#allocation21] }
 0x110   : >>> { %vm546_vm7 = vcmp.eq.s32.totalorder %v542_v6, %v539_v5  ;;  %v508_v53 = vrot.slane %v507_v51, 4  ;;  %v527_v54 = vsel %vm526_vm6, %v523_v52, 0.0  ;;  %v543_v55 = vld [vmem:[%s535_s21] sm:$0xff]  ;;  %s559_s28 = smov [#allocation20]  ;;  %s557_s20 = smov [#allocation19]  ;;  %v648_v5 = vmov %v1999_v5 }
 0x111   : >>> { %v528_v56 = vrot.slane %v527_v54, 4  ;;  %v547_v57 = vsel %vm546_vm7, %v543_v55, 0.0  ;;  %s561_s16 = smov [#allocation21]  ;;  %s636_s21 = smov [#allocation22]  ;;  %v651_v6 = vmov %v2001_v6 }
 0x112   : >>> { %v509_v58 = vadd.f32 %v508_v53, %v507_v51  ;;  %v548_v59 = vrot.slane %v547_v57, 4  ;;  %s2080_s30 = smov %s2006_s30  ;;  %s2083_s26 = smov %s2011_s26 }
 0x113   : >>> { %v529_v60 = vadd.f32 %v528_v56, %v527_v54  ;;  %s2088_s18 = smov %s2019_s18  ;;  %s900_s14 = smov [#allocation27] }
 0x114   : >>> { %v510_v61 = vrot.slane %v509_v58, 2  ;;  %v549_v62 = vadd.f32 %v548_v59, %v547_v57  ;;  %s2093_s19 = smov %s2023_s19  ;;  %s494_s17 = sadd.s32 1, %s1856_s17  }
 0x115   : >>> { %v530_v63 = vrot.slane %v529_v60, 2  ;;  %p491_p11 = scmp.ge.s32.totalorder %s494_s17, 15  }
 0x116   : >>> { %v511_v0 = vadd.f32 %v510_v61, %v509_v58  ;;  %v550_v1 = vrot.slane %v549_v62, 2 }
 0x117   : >>> { %v531_v2 = vadd.f32 %v530_v63, %v529_v60 }
 0x118   : >>> { %v512_v3 = vrot.slane %v511_v0, 1  ;;  %v551_v4 = vadd.f32 %v550_v1, %v549_v62 }
 0x119   : >>> { %v532_v7 = vrot.slane %v531_v2, 1 }
 0x11a   : >>> { %v513_v8 = vadd.f32 %v512_v3, %v511_v0  ;;  %v552_v9 = vrot.slane %v551_v4, 1 }
 0x11b   : >>> { %v533_v10 = vadd.f32 %v532_v7, %v531_v2 }
 0x11c   : >>> { %514 = vst [vmem:[%s496_s22] sm:$0x1] %v513_v8  ;;  %v553_v11 = vadd.f32 %v552_v9, %v551_v4  ;;  %s638_s22 = smov [#allocation23] }
 0x11d   : >>> { %534 = vst [vmem:[%s516_s24] sm:$0x1] %v533_v10  ;;  %s555_s24 = smov [#allocation24] }
 0x11e   : >>> { %554 = vst [vmem:[%s536_s25] sm:$0x1] %v553_v11  ;;  %s556_s25 = smov [#allocation25]  ;;  %s640_s24 = smov %s555_s24 }
 0x11f   : >>> { %s642_s25 = smov %s556_s25 }
 0x123   : >>> { %v558_v19 = vld [vmem:[%s557_s20] sm:$0xff]  ;;  %s659_s20 = smov [#allocation25] }
 0x124   : >>> { %v2064_v12 = vld [vmem:[%s559_s28] sm:$0xff]  ;;  %v612_v43 = vand.u32 2147483647, %v558_v19  ;;  %s644_s28 = smov [#allocation24] }
 0x125   : >>> { %v564_v13 = vmul.f32 2.0, %v2064_v12  ;;  %v562_v20 = vld [vmem:[%s561_s16] sm:$0xff]  ;;  %v613_v51 = vand.u32 2147483647, %v2064_v12  ;;  %s657_s16 = smov [#allocation26] }
 0x126   : >>> { %v563_v23 = vsub.f32 %v562_v20, %v558_v19  ;;  %v614_v44 = vand.u32 2147483647, %v562_v20 }
 0x127   : >>> { %1670 = vrcp.f32 %v564_v13  ;;  %v576_v16 = vand.u32 2147483648, %v564_v13  ;;  %vm570_vm8 = vweird.f32 %v564_v13  ;;  %v574_v18 = vand.u32 2147483647, %v564_v13 }
 0x128   : >>> { %v615_v46 = vmin.f32 %v612_v43, %v614_v44 }
 0x129   : >>> { %v577_v22 = vor.u32 1.1754944e-38, %v576_v16  ;;  %vm575_vm11 = vcmp.eq.f32.partialorder %v574_v18, 8.507059e+37 }
 0x12a   : >>> { %v616_v52 = vmul.f32 1.1920929e-08, %v615_v46 }
 0x12c   : >>> { %vm617_vm4 = vcmp.le.f32.partialorder %v613_v51, %v616_v52 }
 0x12d   : >>> { %v1671_v14 = vpop.eup %1670 }
 0x12e   : >>> { %v566_v15 = vmul.f32 %v1671_v14, %v564_v13  ;;  %vm571_vm9 = vweird.f32 %v1671_v14 }
 0x12f   : >>> { %vm572_vm10 = vmor %vm570_vm8, %vm571_vm9  ;;  %vm653_vm8 = vcmp.eq.s32.totalorder %v651_v6, %v648_v5  ;;  %v663_v5 = vmov %v1999_v5  ;;  %v666_v6 = vmov %v2001_v6 }
 0x130   : >>> { %v567_v17 = vsub.f32 1.0, %v566_v15  ;;  %vm668_vm9 = vcmp.eq.s32.totalorder %v666_v6, %v663_v5  ;;  %v734_v5 = vmov %v1999_v5 }
 0x131   : >>> { %v775_v5 = vmov %v1999_v5 }
 0x132   : >>> { %v568_v21 = vmul.f32 %v1671_v14, %v567_v17  ;;  %v761_v5 = vmov %v1999_v5 }
 0x134   : >>> { %v569_v24 = vadd.f32 %v1671_v14, %v568_v21 }
 0x136   : >>> { %v573_v25 = vsel %vm572_vm10, %v1671_v14, %v569_v24  ;;  %v908_v24 = vld [vmem:[%s2088_s18] sm:$0xff]  ;;  %vm858_vm10 = vcmp.eq.s32.totalorder %v2001_v6, 0 }
 0x137   : >>> { %v578_v26 = vsel %vm575_vm11, %v577_v22, %v573_v25  ;;  %vm870_vm11 = vcmp.eq.s32.totalorder %v2001_v6, 7  ;;  %v737_v6 = vmov %v2001_v6 }
 0x138   : >>> { %v579_v27 = vmul.f32 %v578_v26, %v563_v23  ;;  %v778_v6 = vmov %v2001_v6 }
 0x139   : >>> { %v764_v6 = vmov %v2001_v6 }
 0x13a   : >>> { %v581_v28 = vmul.f32 %v579_v27, %v579_v27  ;;  %vm580_vm14 = vcmp.ge.f32.partialorder %v579_v27, 0.0 }
 0x13c   : >>> { %v582_v29 = vadd.f32 1.0, %v581_v28 }
 0x13e   : >>> { %1672 = vrsqrt.f32 %v582_v29  ;;  %vm590_vm12 = vcmp.eq.f32.partialorder %v582_v29, inf  ;;  %v593_v36 = vand.u32 2147483648, %v582_v29  ;;  %vm592_vm13 = vcmp.eq.f32.partialorder %v582_v29, 0.0 }
 0x144   : >>> { %v1673_v30 = vpop.eup %1672 }
 0x145   : >>> { %v584_v31 = vmul.f32 %v1673_v30, %v582_v29 }
 0x147   : >>> { %v585_v32 = vmul.f32 %v1673_v30, %v584_v31 }
 0x149   : >>> { %v586_v33 = vmul.f32 0.5, %v585_v32 }
 0x14b   : >>> { %v587_v34 = vsub.f32 1.5, %v586_v33 }
 0x14d   : >>> { %v588_v35 = vmul.f32 %v1673_v30, %v587_v34 }
 0x14f   : >>> { %v589_v37 = vmul.f32 %v588_v35, %v582_v29 }
 0x151   : >>> { %v591_v38 = vsel %vm590_vm12, %v582_v29, %v589_v37  ;;  %v909_v29 = vld [vmem:[%s2093_s19] sm:$0xff]  ;;  %vm742_vm12 = vcmp.eq.s32.totalorder %v737_v6, %v734_v5  ;;  %v748_v5 = vmov %v1999_v5  ;;  %v751_v6 = vmov %v2001_v6 }
 0x152   : >>> { %v594_v39 = vsel %vm592_vm13, %v593_v36, %v591_v38  ;;  %vm783_vm13 = vcmp.eq.s32.totalorder %v778_v6, %v775_v5 }
 0x153   : >>> { %v595_v40 = vxor.u32 2147483648, %v594_v39 }
 0x155   : >>> { %v596_v41 = vsel %vm580_vm14, %v594_v39, %v595_v40  ;;  %vm768_vm14 = vcmp.eq.s32.totalorder %v764_v6, %v761_v5 }
 0x156   : >>> { %v597_v42 = vadd.f32 %v596_v41, %v579_v27 }
 0x158   : >>> { %1674 = vrcp.f32 %v597_v42  ;;  %v609_v48 = vand.u32 2147483648, %v597_v42  ;;  %vm603_vm15 = vweird.f32 %v597_v42  ;;  %v607_v50 = vand.u32 2147483647, %v597_v42 }
 0x15a   : >>> { %v610_v54 = vor.u32 1.1754944e-38, %v609_v48  ;;  %vm608_vm3 = vcmp.eq.f32.partialorder %v607_v50, 8.507059e+37 }
 0x15e   : >>> { %v1675_v45 = vpop.eup %1674 }
 0x15f   : >>> { %v599_v47 = vmul.f32 %v1675_v45, %v597_v42  ;;  %vm604_vm0 = vweird.f32 %v1675_v45 }
 0x160   : >>> { %vm605_vm1 = vmor %vm603_vm15, %vm604_vm0  ;;  %vm755_vm15 = vcmp.eq.s32.totalorder %v751_v6, %v748_v5  ;;  %vm814_vm0 = vcmp.eq.s32.totalorder %v1999_v5, 7  ;;  %v398_v6 = vmov (%p491_p11), %v2001_v6 }
 0x161   : >>> { %v600_v49 = vsub.f32 1.0, %v599_v47 }
 0x163   : >>> { %v601_v53 = vmul.f32 %v1675_v45, %v600_v49 }
 0x165   : >>> { %v602_v55 = vadd.f32 %v1675_v45, %v601_v53 }
 0x167   : >>> { %v606_v56 = vsel %vm605_vm1, %v1675_v45, %v602_v55  ;;  %vm797_vm1 = vcmp.eq.s32.totalorder %v1999_v5, 0 }
 0x168   : >>> { %v611_v57 = vsel %vm608_vm3, %v610_v54, %v606_v56  ;;  %vm801_vm3 = vcmp.eq.s32.totalorder %v1999_v5, 1  ;;  %v395_v5 = vmov (%p491_p11), %v1999_v5 }
 0x169   : >>> { %v618_v58 = vsel %vm617_vm4, 0.0, %v611_v57  ;;  %vm410_vm4 = vcmp.eq.s32.totalorder (%p491_p11), %v398_v6, %v395_v5  ;;  %v414_v5 = vmov (%p491_p11), %v1999_v5  ;;  %v417_v6 = vmov (%p491_p11), %v2001_v6 }
 0x16a   : >>> { %v619_v59 = vmul.f32 %v618_v58, %v618_v58  ;;  %v632_v60 = vmul.f32 %v618_v58, %v2064_v12  ;;  %v431_v5 = vmov (%p491_p11), %v1999_v5  ;;  %v434_v6 = vmov (%p491_p11), %v2001_v6 }
 0x16b   : >> { %v448_v5 = vmov (%p491_p11), %v1999_v5  ;;  %v451_v6 = vmov (%p491_p11), %v2001_v6 }
 0x16c   : >>> { %v620_v61 = vadd.f32 1.0, %v619_v59  ;;  %v633_v62 = vsub.f32 %v558_v19, %v632_v60  ;;  %v635_v63 = vadd.f32 %v632_v60, %v562_v20  ;;  %v906_v19 = vld [vmem:[%s2080_s30] sm:$0xff] }
 0x16d   : >>> { %v907_v20 = vld [vmem:[%s2083_s26] sm:$0xff] }
 0x16e   : >>> { %1676 = vrsqrt.f32 %v620_v61  ;;  %637 = vst [vmem:[%s636_s21] sm:$0xff] %v633_v62  ;;  %vm627_vm5 = vweird.f32 %v620_v61  ;;  %s672_s21 = smov [#allocation27] }
 0x16f   : >>> { %639 = vst [vmem:[%s638_s22] sm:$0xff] %v635_v63  ;;  %s674_s22 = smov [#allocation26] }
 0x174   : >>> { %v1677_v0 = vpop.eup %1676 }
 0x175   : >>> { %v622_v1 = vmul.f32 %v1677_v0, %v620_v61  ;;  %vm628_vm6 = vweird.f32 %v1677_v0 }
 0x176   : >>> { %vm629_vm7 = vmor %vm627_vm5, %vm628_vm6  ;;  %vm463_vm5 = vcmp.eq.s32.totalorder (%p491_p11), %v451_v6, %v448_v5 }
 0x177   : >>> { %v623_v2 = vmul.f32 %v1677_v0, %v622_v1 }
 0x179   : >>> { %v624_v3 = vmul.f32 0.5, %v623_v2 }
 0x17b   : >>> { %v625_v4 = vsub.f32 1.5, %v624_v3 }
 0x17d   : >>> { %v626_v7 = vmul.f32 %v1677_v0, %v625_v4 }
 0x17f   : >>> { %v630_v8 = vsel %vm629_vm7, %v1677_v0, %v626_v7 }
 0x180   : >>> { %641 = vst [vmem:[%s640_s24] sm:$0xff] %v630_v8  ;;  %v631_v9 = vmul.f32 %v630_v8, %v618_v58  ;;  %s2073_s24 = smov [#allocation15] }
 0x181   : >>> { %v682_v22 = vld [vmem:[%s2073_s24] sm:$0xff] }
 0x182   : >>> { %643 = vst [vmem:[%s642_s25] sm:$0xff] %v631_v9  ;;  %s2075_s25 = smov [#allocation16] }
 0x183   : >>> { %v683_v16 = vld [vmem:[%s2075_s25] sm:$0xff] }
 0x187   : >>> { %v645_v10 = vld [vmem:[%s644_s28] ss:$0 sm:$0xff]  ;;  %s2077_s28 = smov [#allocation17] }
 0x188   : >>> { %v654_v11 = vsel %vm653_vm8, %v645_v10, 0.0  ;;  %v684_v17 = vld [vmem:[%s2077_s28] sm:$0xff] }
 0x189   : >>> { %655 = vadd.xlane.f32.xlu0 %v654_v11  ;;  %v660_v12 = vld [vmem:[%s659_s20] ss:$0 sm:$0xff]  ;;  %s898_s20 = smov [#allocation26] }
 0x18a   : >>> { %v669_v13 = vsel %vm668_vm9, %v660_v12, 0.0 }
 0x191   : >>> { %670 = vadd.xlane.f32.xlu0 %v669_v13 }
 0x1fc   : >>> { %v656_v14 = vpop.xlane.xlu0 %655 }
 0x1fd   : >>> { %658 = vst [vmem:[%s657_s16] sm:$0xff] %v656_v14  ;;  %s2085_s16 = smov [#allocation18] }
 0x1fe   : >>> { %v685_v23 = vld [vmem:[%s2085_s16] sm:$0xff] }
 0x204   : >>> { %v671_v15 = vpop.xlane.xlu0 %670  ;;  %v675_v18 = vld [vmem:[%s674_s22] sm:$0xff]  ;;  %s704_s22 = smov [#allocation25] }
 0x205   : >>> { %673 = vst [vmem:[%s672_s21] sm:$0xff] %v671_v15  ;;  %s676_s21 = smov [#allocation27]  ;;  %v899_v21 = vld [vmem:[%s898_s20] sm:$0xff]  ;;  %v689_v25 = vmul.f32 %v683_v16, %v675_v18  ;;  %v693_v26 = vmul.f32 %v684_v17, %v675_v18  ;;  %v686_v46 = vmul.f32 %v682_v22, %v675_v18  ;;  %v696_v48 = vmul.f32 %v685_v23, %v675_v18  ;;  %s2107_s20 = smov [#allocation17] }
 0x206   : >>> { %v910_v30 = vmul.f32 %v906_v19, %v899_v21  ;;  %v913_v31 = vmul.f32 %v907_v20, %v899_v21  ;;  %v917_v38 = vmul.f32 %v908_v24, %v899_v21  ;;  %v920_v42 = vmul.f32 %v909_v29, %v899_v21  ;;  %v705_v53 = vld [vmem:[%s704_s22] ss:$0 sm:$0xff]  ;;  %s771_s22 = smov [#allocation18] }
 0x20c   : >>> { %v677_v27 = vld [vmem:[%s676_s21] sm:$0xff]  ;;  %s772_s21 = smov [#allocation23] }
 0x20d   : >>> { %v901_v28 = vld [vmem:[%s900_s14] sm:$0xff]  ;;  %v690_v32 = vmul.f32 %v685_v23, %v677_v27  ;;  %v692_v33 = vmul.f32 %v682_v22, %v677_v27  ;;  %v687_v39 = vmul.f32 %v684_v17, %v677_v27  ;;  %v695_v43 = vmul.f32 %v683_v16, %v677_v27  ;;  %s702_s14 = smov [#allocation24] }
 0x20e   : >>> { %v911_v34 = vmul.f32 %v908_v24, %v901_v28  ;;  %v914_v35 = vmul.f32 %v909_v29, %v901_v28  ;;  %v916_v36 = vmul.f32 %v906_v19, %v901_v28  ;;  %v919_v37 = vmul.f32 %v907_v20, %v901_v28  ;;  %v703_v52 = vld [vmem:[%s702_s14] ss:$0 sm:$0xff]  ;;  %s730_s14 = smov [#allocation15] }
 0x20f   : >>> { %v691_v40 = vsub.f32 %v689_v25, %v690_v32  ;;  %v694_v41 = vadd.f32 %v693_v26, %v692_v33  ;;  %v688_v50 = vsub.f32 %v686_v46, %v687_v39  ;;  %v697_v51 = vadd.f32 %v696_v48, %v695_v43  ;;  %v779_v23 = vld [vmem:[%s772_s21] ss:$0 sm:$0xff]  ;;  %s1859_s21 = smov 1  }
 0x210   : >>> { %v912_v44 = vsub.f32 %v910_v30, %v911_v34  ;;  %v915_v45 = vsub.f32 %v913_v31, %v914_v35  ;;  %v918_v47 = vadd.f32 %v917_v38, %v916_v36  ;;  %v921_v49 = vadd.f32 %v920_v42, %v919_v37 }
 0x211   : >>> { %699 = vst [vmem:[%s2075_s25] sm:$0xff] %v691_v40  ;;  %s2109_s25 = smov [#allocation16] }
 0x212   : >>> { %700 = vst [vmem:[%s2077_s28] sm:$0xff] %v694_v41  ;;  %s2121_s28 = smov [#allocation15] }
 0x213   : >>> { %922 = vst [vmem:[%s2080_s30] sm:$0xff] %v912_v44  ;;  %s926_s30 = smov %s2006_s30 }
 0x214   : >>> { %923 = vst [vmem:[%s2083_s26] sm:$0xff] %v915_v45  ;;  %s2115_s26 = smov %s2011_s26 }
 0x215   : >>> { %924 = vst [vmem:[%s2088_s18] sm:$0xff] %v918_v47  ;;  %s927_s18 = smov %s2019_s18 }
 0x216   : >>> { %925 = vst [vmem:[%s2093_s19] sm:$0xff] %v921_v49  ;;  %s2125_s19 = smov %s2023_s19 }
 0x217   : >>> { %698 = vst [vmem:[%s2073_s24] sm:$0xff] %v688_v50  ;;  %s709_s24 = smov [#allocation18] }
 0x218   : >>> { %701 = vst [vmem:[%s2085_s16] sm:$0xff] %v697_v51  ;;  %v711_v55 = vld [vmem:[%s2109_s25] sm:$0xff]  ;;  %s731_s16 = smov [#allocation22] }
 0x219   : >>> { %v712_v54 = vld [vmem:[%s2107_s20] sm:$0xff]  ;;  %v715_v4 = vmul.f32 %v711_v55, %v705_v53  ;;  %v718_v12 = vmul.f32 %v711_v55, %v703_v52 }
 0x21a   : >>> { %v928_v56 = vld [vmem:[%s926_s30] ss:$0 sm:$0xff]  ;;  %v1557_v58 = vld [vmem:[%s926_s30 + $0x7] ss:$0 sm:$0xff]  ;;  %v723_v9 = vmul.f32 %v712_v54, %v705_v53  ;;  %v720_v10 = vmul.f32 %v712_v54, %v703_v52 }
 0x21b   : >>> { %v1556_v57 = vld [vmem:[%s926_s30 - $0x1] sm:$0xfe]  ;;  %v1561_v62 = vld [vmem:[%s2115_s26 + $0x7] ss:$0 sm:$0xff] }
 0x21c   : >>> { %v935_v59 = vsel %vm858_vm10, %v928_v56, %v1556_v57  ;;  %v952_v60 = vld [vmem:[%s2115_s26] ss:$0 sm:$0xff]  ;;  %v1559_v0 = vld [vmem:[%s927_s18 + $0x1] sm:$0x7f] }
 0x21d   : >>> { %v1560_v61 = vld [vmem:[%s2115_s26 - $0x1] sm:$0xfe]  ;;  %938 = vst [vmem:[%s926_s30] sm:$0xff] %v935_v59  ;;  %v947_v2 = vsel %vm870_vm11, %v1557_v58, %v1559_v0 }
 0x21e   : >>> { %v939_v63 = vld [vmem:[%s927_s18] ss:$0 sm:$0xff]  ;;  %v959_v1 = vsel %vm858_vm10, %v952_v60, %v1560_v61  ;;  %v1563_v3 = vld [vmem:[%s2125_s19 + $0x1] sm:$0x7f] }
 0x21f   : >>> { %1558 = vst [vmem:[%s926_s30 + $0x1] sm:$0x1] %v939_v63  ;;  %v963_v7 = vld [vmem:[%s2125_s19] ss:$0 sm:$0xff]  ;;  %v971_v8 = vsel %vm870_vm11, %v1561_v62, %v1563_v3 }
 0x220   : >>> { %949 = vst [vmem:[%s927_s18] sm:$0xff] %v947_v2  ;;  %v710_v11 = vld [vmem:[%s2121_s28] sm:$0xff] }
 0x221   : >>> { %962 = vst [vmem:[%s2115_s26] sm:$0xff] %v959_v1  ;;  %v713_v13 = vld [vmem:[%s709_s24] sm:$0xff]  ;;  %v714_v14 = vmul.f32 %v710_v11, %v703_v52  ;;  %v717_v15 = vmul.f32 %v710_v11, %v705_v53 }
 0x222   : >>> { %1562 = vst [vmem:[%s2115_s26 + $0x1] sm:$0x1] %v963_v7  ;;  %v721_v16 = vmul.f32 %v713_v13, %v705_v53  ;;  %v724_v17 = vmul.f32 %v713_v13, %v703_v52  ;;  %v738_v22 = vld [vmem:[%s731_s16] ss:$0 sm:$0xff]  ;;  %s2159_s16 = smov [#allocation17] }
 0x223   : >>> { %973 = vst [vmem:[%s2125_s19] sm:$0xff] %v971_v8  ;;  %v716_v18 = vsub.f32 %v714_v14, %v715_v4  ;;  %v719_v21 = vadd.f32 %v718_v12, %v717_v15 }
 0x224   : >>> { %v725_v19 = vadd.f32 %v724_v17, %v723_v9  ;;  %v722_v20 = vsub.f32 %v720_v10, %v721_v16 }
 0x225   : >>> { %726 = vst [vmem:[%s2121_s28] sm:$0xff] %v716_v18  ;;  %s745_s28 = smov [#allocation16] }
 0x226   : >>> { %729 = vst [vmem:[%s709_s24] sm:$0xff] %v725_v19  ;;  %s2157_s24 = smov [#allocation18] }
 0x227   : >>> { %728 = vst [vmem:[%s2107_s20] sm:$0xff] %v722_v20  ;;  %s758_s20 = smov [#allocation17] }
 0x228   : >>> { %727 = vst [vmem:[%s2109_s25] sm:$0xff] %v719_v21  ;;  %s2155_s25 = smov [#allocation15] }
 0x22c   : >>> { %v739_v24 = vld [vmem:[%s730_s14] sm:$0xff] }
 0x22d   : >>> { %v780_v25 = vld [vmem:[%s771_s22] sm:$0xff]  ;;  %v743_v26 = vsel %vm742_vm12, %v738_v22, %v739_v24 }
 0x22e   : >>> { %v784_v27 = vsel %vm783_vm13, %v779_v23, %v780_v25  ;;  %v765_v28 = vld [vmem:[%s758_s20] sm:$0xff]  ;;  %744 = vst [vmem:[%s730_s14] sm:$0xff] %v743_v26  ;;  %s787_s14 = smov [#allocation16] }
 0x22f   : >>> { %785 = vst [vmem:[%s771_s22] sm:$0xff] %v784_v27  ;;  %v769_v29 = vsel %vm768_vm14, 0.0, %v765_v28  ;;  %v752_v30 = vld [vmem:[%s745_s28] sm:$0xff]  ;;  %s1860_s22 = smov 127  }
 0x230   : >>> { %770 = vst [vmem:[%s758_s20] sm:$0xff] %v769_v29  ;;  %v756_v31 = vsel %vm755_vm15, 0.0, %v752_v30  ;;  %s2167_s20 = smov [#allocation16] }
 0x231   : >>> { %757 = vst [vmem:[%s745_s28] sm:$0xff] %v756_v31  ;;  %s851_s28 = smov [#allocation17] }
 0x235   : >>> { %v792_v32 = vld [vmem:[%s2155_s25] sm:$0xff] }
 0x236   : >>> { %v820_v33 = vld [vmem:[%s2157_s24] sm:$0xff]  ;;  %793 = vrot.lane.b32.xlu1 %v792_v32, %s1859_s21 }
 0x237   : >>> { %821 = vrot.lane.b32.xlu0 %v820_v33, %s1859_s21  ;;  %v824_v34 = vld [vmem:[%s2159_s16] sm:$0xff] }
 0x238   : >>> { %825 = vrot.lane.b32.xlu2 %v824_v34, %s1859_s21  ;;  %v809_v35 = vld [vmem:[%s787_s14] sm:$0xff] }
 0x23e   : >>> { %789 = vrot.lane.b32.xlu1 %v809_v35, %s1859_s21  ;;  %s850_s21 = smov [#allocation15] }
 0x240   : >>> { %810 = vrot.lane.b32.xlu2 %v809_v35, %s1860_s22 }
 0x246   : >>> { %842 = vrot.lane.b32.xlu1 %v820_v33, %s1860_s22  ;;  %s435_s22 = smov (%p491_p11), [#allocation17] }
 0x292   : >>> { %v826_v36 = vpop.permute.xlu2 %825 }
 0x293   : >>> { %v830_v44 = vsel %vm797_vm1, %v824_v34, %v826_v36 }
 0x29a   : >>> { %v811_v37 = vpop.permute.xlu2 %810 }
 0x29b   : >>> { %v815_v38 = vsel %vm814_vm0, %v792_v32, %v811_v37 }
 0x29c   : >>> { %817 = vst [vmem:[%s787_s14] sm:$0xff] %v815_v38  ;;  %s418_s14 = smov (%p491_p11), [#allocation16] }
 0x2a3   : >>> { %v876_v39 = vld [vmem:[%s2167_s20] ss:$0 sm:$0xff]  ;;  %v1553_v41 = vld [vmem:[%s2167_s20 + $0x7] ss:$0 sm:$0xff] }
 0x2a4   : >>> { %v1552_v40 = vld [vmem:[%s2167_s20 - $0x1] sm:$0xfe] }
 0x2a5   : >>> { %v883_v42 = vsel %vm858_vm10, %v876_v39, %v1552_v40 }
 0x2a6   : >>> { %886 = vst [vmem:[%s2167_s20] sm:$0xff] %v883_v42 }
 0x2a8   : >>> { %v794_v43 = vpop.permute.xlu1 %793 }
 0x2a9   : >>> { %v822_v45 = vpop.permute.xlu0 %821  ;;  %v798_v48 = vsel %vm797_vm1, %v792_v32, %v794_v43 }
 0x2aa   : >>> { %v834_v46 = vsel %vm801_vm3, %v822_v45, %v830_v44 }
 0x2ab   : >>> { %v840_v47 = vsel %vm1401_vm2, %v834_v46, 0.0 }
 0x2ac   : >>> { %848 = vst [vmem:[%s2159_s16] sm:$0xff] %v840_v47  ;;  %s399_s16 = smov (%p491_p11), [#allocation15] }
 0x2b0   : >>> { %v790_v49 = vpop.permute.xlu1 %789 }
 0x2b1   : >>> { %v802_v50 = vsel %vm801_vm3, %v790_v49, %v798_v48 }
 0x2b2   : >>> { %v808_v51 = vsel %vm1401_vm2, %v802_v50, 0.0 }
 0x2b3   : >>> { %816 = vst [vmem:[%s2155_s25] sm:$0xff] %v808_v51  ;;  %v1551_v53 = vld [vmem:[%s851_s28 + $0x1] sm:$0x7f]  ;;  %v863_v60 = vld [vmem:[%s851_s28] ss:$0 sm:$0xff]  ;;  %s875_s25 = smov [#allocation18] }
 0x2b8   : >>> { %v843_v52 = vpop.permute.xlu1 %842 }
 0x2b9   : >>> { %v847_v54 = vsel %vm814_vm0, %v824_v34, %v843_v52 }
 0x2ba   : >>> { %v852_v55 = vld [vmem:[%s850_s21] ss:$0 sm:$0xff]  ;;  %v1549_v57 = vld [vmem:[%s850_s21 + $0x7] ss:$0 sm:$0xff]  ;;  %849 = vst [vmem:[%s2157_s24] sm:$0xff] %v847_v54  ;;  %s974_s24 = sadd.s32 (%p491_p11), 1, %s1852_s29  }
 0x2bb   : >>> { %v1548_v56 = vld [vmem:[%s850_s21 - $0x1] sm:$0xfe]  ;;  %v871_v59 = vsel %vm870_vm11, %v1549_v57, %v1551_v53  ;;  %p487_p12 = scmp.ge.s32.totalorder (%p491_p11), %s974_s24, 15  ;;  %s2356_s29 = smov (%p491_p11), %s974_s24 }
 0x2bc   : >>> { %v859_v58 = vsel %vm858_vm10, %v852_v55, %v1548_v56  ;;  %873 = vst [vmem:[%s851_s28] sm:$0xff] %v871_v59 }
 0x2bd   : >>> { %862 = vst [vmem:[%s850_s21] sm:$0xff] %v859_v58 }
 0x2be   : >>> { %1550 = vst [vmem:[%s850_s21 + $0x1] sm:$0x1] %v863_v60 }
 0x2c1   : >>> { %v887_v61 = vld [vmem:[%s875_s25] ss:$0 sm:$0xff]  ;;  %v1555_v62 = vld [vmem:[%s875_s25 + $0x1] sm:$0x7f] }
 0x2c2   : >>> { %1554 = vst [vmem:[%s2167_s20 + $0x1] sm:$0x1] %v887_v61  ;;  %v895_v63 = vsel %vm870_vm11, %v1553_v41, %v1555_v62  ;;  %493 = sbr.rel (!%p491_p11) target bundleno = 269 (0x10d), region = 360  ;;  %s452_s20 = smov (%p491_p11), [#allocation18] }
 0x2c3   : >>> { %897 = vst [vmem:[%s875_s25] sm:$0xff] %v895_v63  ;;  %v441_v4 = vld [vmem:[%s435_s22] sm:$0xff] (%p491_p11) }
 0x2c4   : >> { %v442_v10 = vsel (%p491_p11), %vm1401_vm2, %v441_v4, 0.0 }
 0x2c5   : >> { %v405_v0 = vld [vmem:[%s399_s16] sm:$0xff] (%p491_p11)  ;;  %v443_v12 = vmul.f32 (%p491_p11), %v442_v10, %v442_v10 }
 0x2c6   : >> { %v406_v2 = vsel (%p491_p11), %vm1401_vm2, %v405_v0, 0.0 }
 0x2c7   : >> { %v407_v8 = vmul.f32 %v406_v2, %v406_v2 }
 0x2c9   : >> { %v424_v1 = vld [vmem:[%s418_s14] sm:$0xff]  ;;  %v411_v15 = vsel %vm410_vm4, 0.0, %v407_v8 }
 0x2ca   : >> { %v425_v3 = vsel %vm1401_vm2, %v424_v1, 0.0  ;;  %v458_v7 = vld [vmem:[%s452_s20] sm:$0xff] }
 0x2cb   : >> { %v426_v9 = vmul.f32 %v425_v3, %v425_v3  ;;  %v459_v11 = vsel %vm1401_vm2, %v458_v7, 0.0 }
 0x2cc   : >> { %v460_v14 = vmul.f32 %v459_v11, %v459_v11 }
 0x2cd   : >> { %v428_v13 = vadd.f32 %v426_v9, %v407_v8  ;;  %v427_v17 = vadd.f32 %v426_v9, %v411_v15 }
 0x2ce   : >> { %v464_v20 = vsel %vm463_vm5, 0.0, %v460_v14 }
 0x2cf   : >> { %v445_v16 = vadd.f32 %v443_v12, %v428_v13  ;;  %v444_v19 = vadd.f32 %v443_v12, %v427_v17 }
 0x2d1   : >> { %v466_v18 = vadd.f32 %v460_v14, %v445_v16  ;;  %v465_v21 = vadd.f32 %v464_v20, %v444_v19 }
 0x2d3   : >> { %467 = vadd.xlane.f32.xlu0 %v466_v18 }
 0x2db   : >> { %475 = vadd.xlane.f32.xlu0 %v465_v21 }
 0x346   : >> { %v468_v22 = vpop.xlane.xlu0 %467 }
 0x347   : >> { %v469_v23 = vrot.slane %v468_v22, 4 }
 0x349   : >> { %v470_v24 = vadd.f32 %v469_v23, %v468_v22 }
 0x34b   : >> { %v471_v25 = vrot.slane %v470_v24, 2 }
 0x34d   : >> { %v472_v29 = vadd.f32 %v471_v25, %v470_v24 }
 0x34e   : >> { %v476_v26 = vpop.xlane.xlu0 %475 }
 0x34f   : >> { %v477_v27 = vrot.slane %v476_v26, 4  ;;  %v473_v32 = vrot.slane %v472_v29, 1 }
 0x351   : >> { %v478_v28 = vadd.f32 %v477_v27, %v476_v26  ;;  %v474_v35 = vadd.f32 %v473_v32, %v472_v29 }
 0x353   : >> { %v479_v30 = vrot.slane %v478_v28, 2 }
 0x355   : >> { %v480_v31 = vadd.f32 %v479_v30, %v478_v28 }
 0x357   : >> { %v481_v33 = vrot.slane %v480_v31, 1 }
 0x359   : >> { %v482_v34 = vadd.f32 %v481_v33, %v480_v31 }
 0x35b   : >> { %1586 = vpush %v482_v34 }
 0x35c   : >> { %1588 = vpush %v474_v35 }
 0x38c   : >> { %s1587_s17 = spop %1586 }
 0x38d   : >> { %s1589_s28 = spop %1588 }
 0x38e   : >> { %s485_s21 = smul.f32 1e-10, %s1589_s28 }
 0x390   : >> { %p486_p13 = scmp.le.f32.partialorder %s1587_s17, %s485_s21 }
 0x392   : >> { %p488_p0 = por %p487_p12, %p486_p13 }
 0x394   : > { %976 = sbr.rel (!%p488_p0) target bundleno = 268 (0x10c), region = 371 }
 0x399 PF: > { %s981_s25 = smov [#allocation15]  ;;  %v985_v5 = vmov %v1999_v5  ;;  %v988_v6 = vmov %v2001_v6  ;;  %s1001_s16 = smov [#allocation18] }
 0x39a   : > { %v1005_v5 = vmov %v1999_v5  ;;  %v1008_v6 = vmov %v2001_v6  ;;  %v989_v36 = vld [vmem:[%s981_s25] sm:$0xff]  ;;  %vm992_vm6 = vcmp.eq.s32.totalorder %v988_v6, %v985_v5  ;;  %s977_s29 = sand.u32 7, %s1832_s11   ;;  %s2357_s22 = scalar_lea.vmem [#allocation7], %s1997_s27 }
 0x39b   : > { %vm1012_vm7 = vcmp.eq.s32.totalorder %v1008_v6, %v1005_v5  ;;  %v993_v37 = vsel %vm992_vm6, %v989_v36, 0.0  ;;  %v1009_v39 = vld [vmem:[%s1001_s16] sm:$0xff]  ;;  %s978_s24 = scalar_lea.vmem [#allocation4], %s977_s29  ;;  %s980_s14 = scalar_lea.vmem [#allocation6], %s977_s29 }
 0x39c   : > { %v994_v38 = vrot.slane %v993_v37, 4  ;;  %v1013_v40 = vsel %vm1012_vm7, %v1009_v39, 0.0  ;;  %s982_s24 = smov %s978_s24  ;;  %s1002_s14 = smov %s980_s14 }
 0x39d   : > { %v1014_v42 = vrot.slane %v1013_v40, 4  ;;  %s1064_s21 = sshrl.u32 (%p1959_p4), %s1832_s11, 3 }
 0x39e   : > { %v995_v41 = vadd.f32 %v994_v38, %v993_v37  ;;  %s1065_s25 = sadd.s32 (%p1959_p4), %s1836_s12, %s1064_s21 }
 0x39f   : > { %v1015_v44 = vadd.f32 %v1014_v42, %v1013_v40  ;;  %s1570_s16 = sshll.u32 (%p1959_p4), %s1065_s25, 2 }
 0x3a0   : > { %v996_v43 = vrot.slane %v995_v41, 2 }
 0x3a1   : > { %v1016_v46 = vrot.slane %v1015_v44, 2 }
 0x3a2   : > { %v997_v45 = vadd.f32 %v996_v43, %v995_v41 }
 0x3a3   : > { %v1017_v48 = vadd.f32 %v1016_v46, %v1015_v44 }
 0x3a4   : > { %v998_v47 = vrot.slane %v997_v45, 1 }
 0x3a5   : > { %v1018_v6 = vrot.slane %v1017_v48, 1 }
 0x3a6   : > { %v999_v5 = vadd.f32 %v998_v47, %v997_v45 }
 0x3a7   : > { %v1019_v49 = vadd.f32 %v1018_v6, %v1017_v48 }
 0x3a8   : > { %1000 = vst [vmem:[%s982_s24] sm:$0x1] %v999_v5 }
 0x3a9   : > { %1020 = vst [vmem:[%s1002_s14] sm:$0x1] %v1019_v49  ;;  %s1067_s14 = scalar_lea.vmem (%p1959_p4), %s2334_s4, %s1570_s16 }
 0x3ad   : > { %1063 = sbr.rel (!%p1959_p4) target bundleno = 953 (0x3b9), region = 174 }
 0x3af   : > { %v1023_v50 = vld [vmem:[#allocation4] sm:$0xf] }
 0x3b0   : > { %1026 = vst [vmem:[%s320_s10] sm:$0xf] %v1023_v50  ;;  %v1029_v51 = vld [vmem:[#allocation6] sm:$0xf] }
 0x3b1   : > { %1032 = vst [vmem:[%s2357_s22] sm:$0xf] %v1029_v51 }
 0x3b7   : > { %v1084_v52 = vld [vmem:[%s320_s10] sm:$0xf] }
 0x3b8   : > { %1085 = vst [vmem:[%s1067_s14] sm:$0xf] %v1084_v52 }
 0x3b9 PF: > { %1103 = sbr.rel (!%p1959_p4) target bundleno = 961 (0x3c1), region = 208  ;;  %s1104_s22 = sshrl.u32 (%p1959_p4), %s1832_s11, 3 }
 0x3ba   : > { %s1105_s28 = sadd.s32 (%p1959_p4), %s1836_s12, %s1104_s22  ;;  %s2358_s20 = scalar_lea.vmem (%p1959_p4), [#allocation7], %s1997_s27 }
 0x3bb   : > { %s1571_s21 = sshll.u32 (%p1959_p4), %s1105_s28, 2 }
 0x3bc   : > { %s1107_s25 = scalar_lea.vmem (%p1959_p4), %s2335_s5, %s1571_s21 }
 0x3bf   : > { %v1124_v53 = vld [vmem:[%s2358_s20] sm:$0xf] }
 0x3c0   : > { %1125 = vst [vmem:[%s1107_s25] sm:$0xf] %v1124_v53 }
 0x3c1 PF: > { %s1572_s23 = sshll.u32 %s1836_s12, 2  ;;  %s1161_s16 = sshll.u32 %s2011_s26, 4  ;;  %s1162_s16 = int_to_ptr.vmem [resolvable:$true] %s1161_s16 }
 0x3c2   : > { %s1144_s29 = sadd.s32 %s1832_s11, %s1572_s23  ;;  %s1148_s27 = sshll.u32 %s2006_s30, 4  ;;  %s1149_s27 = int_to_ptr.vmem [resolvable:$true] %s1148_s27 }
 0x3c3   : > { %s2253_s24 = sshll.u32 %s1144_s29, 3  ;;  %s1694_s30 = scalar_lea.hbm %s2337_s7, 64 }
 0x3c4   : > { %s1159_s17 = scalar_lea.hbm %s2337_s7, %s2253_s24  ;;  %s1146_s21 = scalar_lea.hbm %s2336_s6, %s2253_s24 }
 0x3c5   : > { %s1163_s10 = sshll.u32 %s1159_s17, 4  ;;  %s1150_s12 = sshll.u32 %s1146_s21, 4  ;;  %s1164_s10 = int_to_ptr.hbm [resolvable:$true] %s1163_s10  ;;  %s1151_s12 = int_to_ptr.hbm [resolvable:$true] %s1150_s12 }
 0x3c6   : > { %s1690_s26 = sshra.s32 %s1164_s10, 4  ;;  %s1691_s26 = int_to_ptr.hbm [resolvable:$true] %s1690_s26 }
 0x3c7   : > { %s1692_s11 = scalar_lea.hbm %s1691_s26, 8  ;;  %p1695_p2 = scmp.lt.s32.totalorder %s1691_s26, %s2337_s7 }
 0x3c8   : > { %p1693_p1 = scmp.ne.s32.totalorder %s1691_s26, %s1692_s11  ;;  %p1696_p3 = scmp.lt.s32.totalorder %s1694_s30, %s1692_s11 }
 0x3ca   : > { %p1697_p4 = por %p1696_p3, %p1695_p2 }
 0x3cc   : > { %p1698_p5 = pnand %p1697_p4, %p1693_p1 }
 0x3ce   : > { %1701 = shalt.err (!%p1698_p5)
}
 0x3cf   : > { %s2359_s20 = scalar_lea.sflag [#allocation11], %s1991_s9  ;;  %s1172_s14 = scalar_lea.hbm %s2338_s8, %s2253_s24 }
 0x3d0   : > { %1166 = dma.vmem_to_hbm [thread:$0]  %s1162_s16, 128, %s1164_s10, %s2359_s20  }
 0x3d1   : > { %s1714_s22 = sshra.s32 %s1151_s12, 4  ;;  %s1718_s26 = scalar_lea.hbm %s2336_s6, 64  ;;  %s1715_s22 = int_to_ptr.hbm [resolvable:$true] %s1714_s22 }
 0x3d2   : > { %s1716_s21 = scalar_lea.hbm %s1715_s22, 8  ;;  %p1719_p7 = scmp.lt.s32.totalorder %s1715_s22, %s2336_s6 }
 0x3d3   : > { %p1717_p6 = scmp.ne.s32.totalorder %s1715_s22, %s1716_s21  ;;  %p1720_p8 = scmp.lt.s32.totalorder %s1718_s26, %s1716_s21 }
 0x3d5   : > { %p1721_p9 = por %p1720_p8, %p1719_p7 }
 0x3d7   : > { %p1722_p10 = pnand %p1721_p9, %p1717_p6 }
 0x3d9   : > { %1725 = shalt.err (!%p1722_p10)
}
 0x3da   : > { %s2360_s16 = scalar_lea.sflag [#allocation9], %s1991_s9  ;;  %s1174_s10 = sshll.u32 %s2019_s18, 4  ;;  %s1175_s10 = int_to_ptr.vmem [resolvable:$true] %s1174_s10 }
 0x3db   : > { %1153 = dma.vmem_to_hbm [thread:$0]  %s1149_s27, 128, %s1151_s12, %s2360_s16  }
 0x3dc   : > { %s1176_s30 = sshll.u32 %s1172_s14, 4  ;;  %s1742_s22 = scalar_lea.hbm %s2338_s8, 64  ;;  %s1177_s30 = int_to_ptr.hbm [resolvable:$true] %s1176_s30 }
 0x3dd   : > { %s1738_s29 = sshra.s32 %s1177_s30, 4  ;;  %s1739_s29 = int_to_ptr.hbm [resolvable:$true] %s1738_s29 }
 0x3de   : > { %s1740_s20 = scalar_lea.hbm %s1739_s29, 8  ;;  %p1743_p12 = scmp.lt.s32.totalorder %s1739_s29, %s2338_s8 }
 0x3df   : > { %p1741_p11 = scmp.ne.s32.totalorder %s1739_s29, %s1740_s20  ;;  %p1744_p13 = scmp.lt.s32.totalorder %s1742_s22, %s1740_s20 }
 0x3e1   : > { %p1745_p0 = por %p1744_p13, %p1743_p12 }
 0x3e3   : > { %p1746_p1 = pnand %p1745_p0, %p1741_p11 }
 0x3e5   : > { %1749 = shalt.err (!%p1746_p1)
}
 0x3e6   : > { %s2361_s18 = scalar_lea.sflag [#allocation11], %s1991_s9  ;;  %s2362_s14 = sld [smem:[#allocation37_spill]] }
 0x3e7   : > { %1179 = dma.vmem_to_hbm [thread:$0]  %s1175_s10, 128, %s1177_s30, %s2361_s18  }
 0x3e8   : > { %s1187_s11 = sshll.u32 %s2023_s19, 4  ;;  %s1188_s11 = int_to_ptr.vmem [resolvable:$true] %s1187_s11 }
 0x3ec   : > { %s2363_s0 = smov %s2362_s14  ;;  %s1185_s26 = scalar_lea.hbm %s2362_s14, %s2253_s24 }
 0x3ed   : > { %s1189_s23 = sshll.u32 %s1185_s26, 4  ;;  %s1766_s17 = scalar_lea.hbm %s2363_s0, 64  ;;  %s1190_s23 = int_to_ptr.hbm [resolvable:$true] %s1189_s23 }
 0x3ee   : > { %s1762_s16 = sshra.s32 %s1190_s23, 4  ;;  %s1763_s16 = int_to_ptr.hbm [resolvable:$true] %s1762_s16 }
 0x3ef   : > { %s1764_s29 = scalar_lea.hbm %s1763_s16, 8  ;;  %p1767_p3 = scmp.lt.s32.totalorder %s1763_s16, %s2363_s0 }
 0x3f0   : > { %p1765_p2 = scmp.ne.s32.totalorder %s1763_s16, %s1764_s29  ;;  %p1768_p4 = scmp.lt.s32.totalorder %s1766_s17, %s1764_s29 }
 0x3f2   : > { %p1769_p5 = por %p1768_p4, %p1767_p3 }
 0x3f4   : > { %p1770_p6 = pnand %p1769_p5, %p1765_p2 }
 0x3f6   : > { %1773 = shalt.err (!%p1770_p6)
}
 0x3f7   : > { %s2364_s19 = scalar_lea.sflag [#allocation14], %s1991_s9 }
 0x3f8   : > { %1192 = dma.vmem_to_hbm [thread:$0]  %s1188_s11, 128, %s1190_s23, %s2364_s19  }
 0x3f9 PF: > { %p1594_p7 = scmp.ge.s32.totalorder %s1848_s15, 2  ;;  %s2365_s24 = sadd.s32 4294967294, %s1848_s15  }
 0x3fa   : > { %s1212_s10 = sand.u32 1, %s2365_s24  }
 0x3fb   : > { %s1213_s30 = scalar_lea.sflag [#allocation9], %s1212_s10 }
 0x3fc   : > { %1811 = dma.done.wait (%p1594_p7), %s1213_s30, 128  }
 0x3fd   : > { %1813 = vsyncadd (%p1594_p7), %s1213_s30, 4294967168  ;;  %s1220_s25 = scalar_lea.sflag [#allocation11], %s1212_s10 }
 0x3fe   : > { %1815 = dma.done.wait (%p1594_p7), %s1220_s25, 256  }
 0x3ff   : > { %1817 = vsyncadd (%p1594_p7), %s1220_s25, 4294967040  ;;  %s1234_s18 = scalar_lea.sflag [#allocation14], %s1212_s10 }
 0x400   : > { %1819 = dma.done.wait (%p1594_p7), %s1234_s18, 128  }
 0x401   : > { %1821 = vsyncadd (%p1594_p7), %s1234_s18, 4294967168  ;;  %s25_s15 = sadd.s32 1, %s1848_s15   ;;  %s2366_s30 = sld [smem:[#allocation31_spill]] }
 0x402   : > { %p22_p8 = scmp.ge.s32.totalorder %s25_s15, 10   ;;  %s2367_s10 = sld [smem:[#allocation35_spill]] }
 0x403   : > { %s2368_s12 = sld [smem:[#allocation32_spill]]  ;;  %s2371_s11 = smov %s1840_s13 }
 0x404   : > { %s2369_s9 = sld [smem:[#allocation33_spill]] }
 0x405   : > { %s2370_s14 = sld [smem:[#allocation34_spill]] }
 0x406   :  { %24 = sbr.rel (!%p22_p8) target bundleno = 12 (0xc), region = 382 }
 0x40a   : > { %s2372_s13 = smov %s2369_s9 }
 0x40b   :  { %1240 = vsyncpa [#allocation9], 1 }
 0x40c   :  { %1242 = vsyncpa [#allocation9 + $0x1], 1 }
 0x40d   :  { %1243 = vsyncpa [#allocation11], 1 }
 0x40e   :  { %1245 = vsyncpa [#allocation11 + $0x1], 1 }
 0x40f   :  { %1246 = vsyncpa [#allocation14], 1 }
 0x410   :  { %1248 = vsyncpa [#allocation14 + $0x1], 1 }

// kernel: riemannian_geodesic_distance.2
= control target key start
LH: loop header
LB: loop body
LE: loop exit
PB: predicated region body
PF: predicated region fallthrough
CT: control target
= control target key end

     0   :  { %vm17_vm0 = vcmask 130048   ;;  %s259_s20 = smov 112   ;;  %s260_s21 = smov 80   ;;  %s379_s1 = inlined_call_operand.vmem [shape: f32[16,64], index: 1, kind: input, shape index: {}]   ;;  %s380_s0 = inlined_call_operand.vmem [shape: f32[2,16,16], index: 0, kind: input, shape index: {}]   ;;  %s381_s2 = inlined_call_operand.vmem [shape: f32[2,4,16,16], index: 2, kind: output, shape index: {}]  }
   0x1   :  { %v16_v0 = vld [vmem:[%s379_s1 + $0x8] sm:$0xff]  ;;  %v15_v1 = vld [vmem:[%s379_s1] sm:$0xff]  ;;  %v14_v4 = vld [vmem:[%s380_s0 + $0x18] sm:$0xff] }
   0x2   :  { %44 = vmatpush.msra.mxu0 %v16_v0  ;;  %v11_v2 = vld [vmem:[%s380_s0] sm:$0xff]  ;;  %v12_v3 = vld [vmem:[%s380_s0 + $0x8] sm:$0xff]  ;;  %182 = vmatpush.msra.mxu2 %v14_v4  ;;  %v13_v5 = vld [vmem:[%s380_s0 + $0x10] sm:$0xff]  ;;  %s261_s0 = smov 96  }
   0x3   :  { %250 = vmatpush.msra.mxu1 %v12_v3  ;;  %251 = vmatpush.msra.mxu3 %v12_v3 }
   0x4   :  { %45 = vmatpush.msra.mxu0 %v15_v1  ;;  %183 = vmatpush.msra.mxu2 %v13_v5 }
   0x5   :  { %222 = vmatmul.msk.f32.vlgmr.msra.gmra.mxu0 %vm17_vm0, %v11_v2  ;;  %252 = vmatpush.msra.mxu1 %v11_v2 }
   0x6   :  { %103 = vmatpush.msrb.mxu0 %v12_v3  ;;  %253 = vmatpush.msra.mxu3 %v11_v2 }
   0x8   :  { %104 = vmatpush.msrb.mxu0 %v11_v2  ;;  %254 = vmatpush.msrb.mxu3 %v14_v4 }
   0xa   :  { %255 = vmatpush.msrb.mxu3 %v13_v5 }
   0xd   :  { %223 = vmatmul.msk.f32.gmra.mxu0 %vm17_vm0, %v12_v3 }
  0x15   :  { %224 = vmatmul.msk.f32.gmra.mxu0 %vm17_vm0, %v13_v5 }
  0x1d   :  { %225 = vmatmul.msk.f32.gmra.mxu0 %vm17_vm0, %v14_v4 }
  0x82   :  { %v47_v6 = vpop.f32.mrf.mxu0 }
  0x83   :  { %61 = vrot.lane.b32.xlu1 %v47_v6, %s259_s20  ;;  %69 = vrot.lane.b32.xlu0 %v47_v6, %s260_s21 }
  0x84   :  { %226 = vmatmul.msk.f32.vlgmr.msrb.gmra.mxu0 %vm17_vm0, %v47_v6 }
  0x8a   :  { %v50_v7 = vpop.f32.mrf.mxu0 }
  0x8b   :  { %71 = vrot.lane.b32.xlu0 %v50_v7, %s260_s21  ;;  %227 = vmatmul.msk.f32.vlgmr.msra.gmra.mxu1 %vm17_vm0, %v50_v7 }
  0x92   :  { %v53_v8 = vpop.f32.mrf.mxu0 }
  0x93   :  { %140 = vrot.lane.b32.xlu1 %v53_v8, %s259_s20  ;;  %234 = vmatmul.msk.f32.vlgmr.msra.gmra.mxu2 %vm17_vm0, %v53_v8 }
  0x9a   :  { %v56_v9 = vpop.f32.mrf.mxu0 }
  0x9b   :  { %148 = vrot.lane.b32.xlu1 %v53_v8, %s260_s21  ;;  %142 = vrot.lane.b32.xlu0 %v56_v9, %s259_s20 }
  0x9c   :  { %146 = vrot.lane.b32.xlu2 %v56_v9, %s261_s0  ;;  %235 = vmatmul.msk.f32.gmra.mxu2 %vm17_vm0, %v56_v9 }
  0xa3   :  { %150 = vrot.lane.b32.xlu1 %v56_v9, %s260_s21  ;;  %144 = vrot.lane.b32.xlu0 %v53_v8, %s261_s0 }
  0xa4   :  { %63 = vrot.lane.b32.xlu2 %v50_v7, %s259_s20 }
  0xac   :  { %65 = vrot.lane.b32.xlu2 %v47_v6, %s261_s0 }
  0xb4   :  { %67 = vrot.lane.b32.xlu2 %v50_v7, %s261_s0 }
  0xf5   :  { %v62_v10 = vpop.permute.xlu1 %61  ;;  %v70_v11 = vpop.permute.xlu0 %69 }
  0xf6   :  { %v147_v12 = vpop.permute.xlu2 %146  ;;  %228 = vmatmul.msk.f32.gmra.mxu1 %vm17_vm0, %v62_v10  ;;  %232 = vmatmul.msk.f32.vlgmr.msra.gmra.mxu3 %vm17_vm0, %v70_v11 }
  0xfd   :  { %v72_v13 = vpop.permute.xlu0 %71 }
  0xfe   :  { %v64_v14 = vpop.permute.xlu2 %63  ;;  %233 = vmatmul.msk.f32.gmra.mxu3 %vm17_vm0, %v72_v13 }
  0xff   :  { %229 = vmatmul.msk.f32.gmra.mxu1 %vm17_vm0, %v64_v14 }
 0x101   :  { %v106_v15 = vpop.f32.mrf.mxu0 }
 0x102   :  { %130 = vst.msk [vmem:[%s381_s2] sm:$0xff] %vm17_vm0, %v106_v15 }
 0x105   :  { %v141_v16 = vpop.permute.xlu1 %140 }
 0x106   :  { %v66_v17 = vpop.permute.xlu2 %65  ;;  %236 = vmatmul.msk.f32.gmra.mxu2 %vm17_vm0, %v141_v16  ;;  %239 = vmatmul.msk.f32.vlgmr.msrb.gmra.mxu3 %vm17_vm0, %v147_v12 }
 0x107   :  { %230 = vmatmul.msk.f32.gmra.mxu1 %vm17_vm0, %v66_v17 }
 0x108   :  { %v109_v18 = vpop.f32.mrf.mxu1 }
 0x109   :  { %131 = vst.msk [vmem:[%s381_s2 + $0x8] sm:$0xff] %vm17_vm0, %v109_v18 }
 0x10d   :  { %v149_v19 = vpop.permute.xlu1 %148  ;;  %v143_v20 = vpop.permute.xlu0 %142 }
 0x10e   :  { %v68_v21 = vpop.permute.xlu2 %67  ;;  %237 = vmatmul.msk.f32.gmra.mxu2 %vm17_vm0, %v143_v20  ;;  %240 = vmatmul.msk.f32.gmra.mxu3 %vm17_vm0, %v149_v19 }
 0x10f   :  { %231 = vmatmul.msk.f32.gmra.mxu1 %vm17_vm0, %v68_v21 }
 0x115   :  { %v151_v22 = vpop.permute.xlu1 %150  ;;  %v145_v23 = vpop.permute.xlu0 %144 }
 0x116   :  { %v185_v24 = vpop.f32.mrf.mxu2  ;;  %238 = vmatmul.msk.f32.gmra.mxu2 %vm17_vm0, %v145_v23  ;;  %241 = vmatmul.msk.f32.gmra.mxu3 %vm17_vm0, %v151_v22 }
 0x117   :  { %242 = vst.msk [vmem:[%s381_s2 + $0x40] sm:$0xff] %vm17_vm0, %v185_v24 }
 0x11f   :  { %v188_v25 = vpop.f32.mrf.mxu2 }
 0x120   :  { %243 = vst.msk [vmem:[%s381_s2 + $0x48] sm:$0xff] %vm17_vm0, %v188_v25 }
 0x173   :  { %v112_v26 = vpop.f32.mrf.mxu1 }
 0x174   :  { %132 = vst.msk [vmem:[%s381_s2 + $0x10] sm:$0xff] %vm17_vm0, %v112_v26 }
 0x179   :  { %v124_v27 = vpop.f32.mrf.mxu3 }
 0x17a   :  { %136 = vst.msk [vmem:[%s381_s2 + $0x30] sm:$0xff] %vm17_vm0, %v124_v27 }
 0x17c   :  { %v115_v28 = vpop.f32.mrf.mxu1 }
 0x17d   :  { %133 = vst.msk [vmem:[%s381_s2 + $0x18] sm:$0xff] %vm17_vm0, %v115_v28 }
 0x181   :  { %v127_v29 = vpop.f32.mrf.mxu3 }
 0x182   :  { %137 = vst.msk [vmem:[%s381_s2 + $0x38] sm:$0xff] %vm17_vm0, %v127_v29 }
 0x184   :  { %v118_v30 = vpop.f32.mrf.mxu1 }
 0x185   :  { %134 = vst.msk [vmem:[%s381_s2 + $0x20] sm:$0xff] %vm17_vm0, %v118_v30 }
 0x189   :  { %v191_v31 = vpop.f32.mrf.mxu2  ;;  %v200_v32 = vpop.f32.mrf.mxu3 }
 0x18a   :  { %244 = vst.msk [vmem:[%s381_s2 + $0x50] sm:$0xff] %vm17_vm0, %v191_v31 }
 0x18b   :  { %247 = vst.msk [vmem:[%s381_s2 + $0x68] sm:$0xff] %vm17_vm0, %v200_v32 }
 0x18c   :  { %v121_v33 = vpop.f32.mrf.mxu1 }
 0x18d   :  { %135 = vst.msk [vmem:[%s381_s2 + $0x28] sm:$0xff] %vm17_vm0, %v121_v33 }
 0x191   :  { %v194_v34 = vpop.f32.mrf.mxu2  ;;  %v203_v35 = vpop.f32.mrf.mxu3 }
 0x192   :  { %245 = vst.msk [vmem:[%s381_s2 + $0x58] sm:$0xff] %vm17_vm0, %v194_v34 }
 0x193   :  { %248 = vst.msk [vmem:[%s381_s2 + $0x70] sm:$0xff] %vm17_vm0, %v203_v35 }
 0x199   :  { %v197_v36 = vpop.f32.mrf.mxu2  ;;  %v206_v37 = vpop.f32.mrf.mxu3 }
 0x19a   :  { %246 = vst.msk [vmem:[%s381_s2 + $0x60] sm:$0xff] %vm17_vm0, %v197_v36 }
 0x19b   :  { %249 = vst.msk [vmem:[%s381_s2 + $0x78] sm:$0xff] %vm17_vm0, %v206_v37 }

// kernel: riemannian_geodesic_distance.3
= control target key start
LH: loop header
LB: loop body
LE: loop exit
PB: predicated region body
PF: predicated region fallthrough
CT: control target
= control target key end

     0   :  { %vm11_vm0 = vcmask 125952   ;;  %s152_s0 = inlined_call_operand.vmem [shape: f32[2,4,16], index: 0, kind: input, shape index: {}]   ;;  %s153_s1 = inlined_call_operand.hbm [shape: f32[2,4], index: 1, kind: output, shape index: {}]  }
   0x1   :  { %v9_v0 = vld [vmem:[%s152_s0] sm:$0xf] }
   0x2   :  { %v12_v1 = vsel %vm11_vm0, %v9_v0, -inf }
   0x3   :  { %6 = vsyncpa [#allocation3], 0  ;;  %13 = vmax.xlane.f32.xlu0 %v12_v1  ;;  %v10_v2 = vld [vmem:[%s152_s0 + $0x4] sm:$0xf]  ;;  %v68_v43 = vlaneseq  ;;  %s128_s0 = smov [#allocation2]   ;;  %s84_s13 = sshll.u32 %s153_s1, 4  ;;  %s85_s13 = int_to_ptr.hbm [resolvable:$true] %s84_s13 }
   0x4   :  { %v15_v3 = vsel %vm11_vm0, %v10_v2, -inf  ;;  %s82_s10 = sshll.u32 %s128_s0, 4  ;;  %vm72_vm9 = vcmask 1041409   ;;  %vm75_vm10 = vcmask 25600   ;;  %s83_s10 = int_to_ptr.vmem [resolvable:$true] %s82_s10 }
   0x5   :  { %v69_v44 = vand.u32 127, %v68_v43 }
   0xb   :  { %16 = vmax.xlane.f32.xlu0 %v15_v3 }
  0x76   :  { %v14_v4 = vpop.xlane.xlu0 %13 }
  0x77   :  { %v18_v5 = vmul.f32 1e-07, %v14_v4 }
  0x79   :  { %v20_v6 = vmax.f32 %v18_v5, 1e-12 }
  0x7b   :  { %v22_v7 = vmax.f32 %v9_v0, %v20_v6 }
  0x7d   :  { %94 = vrcp.f32 %v22_v7  ;;  %v39_v15 = vand.u32 2147483648, %v22_v7  ;;  %v37_v17 = vand.u32 2147483647, %v22_v7  ;;  %vm33_vm2 = vweird.f32 %v22_v7 }
  0x7e   :  { %v17_v8 = vpop.xlane.xlu0 %16  ;;  %96 = vlog2.f32 %v22_v7 }
  0x7f   :  { %v19_v9 = vmul.f32 1e-07, %v17_v8  ;;  %v40_v21 = vor.u32 1.1754944e-38, %v39_v15  ;;  %vm38_vm4 = vcmp.eq.f32.partialorder %v37_v17, 8.507059e+37 }
  0x81   :  { %v21_v10 = vmax.f32 %v19_v9, 1e-12 }
  0x83   :  { %v95_v11 = vpop.eup %94  ;;  %v23_v12 = vmax.f32 %v10_v2, %v21_v10 }
  0x84   :  { %v29_v13 = vmul.f32 %v95_v11, %v22_v7  ;;  %vm34_vm1 = vweird.f32 %v95_v11  ;;  %v97_v18 = vpop.eup %96 }
  0x85   :  { %98 = vrcp.f32 %v23_v12  ;;  %vm35_vm3 = vmor %vm33_vm2, %vm34_vm1  ;;  %v25_v22 = vmul.f32 0.6931472, %v97_v18  ;;  %v54_v28 = vand.u32 2147483648, %v23_v12  ;;  %v52_v31 = vand.u32 2147483647, %v23_v12 }
  0x86   :  { %v30_v14 = vsub.f32 1.0, %v29_v13  ;;  %100 = vlog2.f32 %v23_v12  ;;  %vm48_vm6 = vweird.f32 %v23_v12 }
  0x87   :  { %v55_v35 = vor.u32 1.1754944e-38, %v54_v28  ;;  %vm53_vm8 = vcmp.eq.f32.partialorder %v52_v31, 8.507059e+37 }
  0x88   :  { %v31_v16 = vmul.f32 %v95_v11, %v30_v14 }
  0x8a   :  { %v32_v19 = vadd.f32 %v95_v11, %v31_v16 }
  0x8b   :  { %v99_v20 = vpop.eup %98 }
  0x8c   :  { %v36_v23 = vsel %vm35_vm3, %v95_v11, %v32_v19  ;;  %v44_v24 = vmul.f32 %v99_v20, %v23_v12  ;;  %vm49_vm5 = vweird.f32 %v99_v20  ;;  %v101_v32 = vpop.eup %100 }
  0x8d   :  { %v41_v25 = vsel %vm38_vm4, %v40_v21, %v36_v23  ;;  %vm50_vm7 = vmor %vm48_vm6, %vm49_vm5  ;;  %v27_v36 = vmul.f32 0.6931472, %v101_v32 }
  0x8e   :  { %v42_v26 = vmul.f32 %v41_v25, %v25_v22  ;;  %v45_v27 = vsub.f32 1.0, %v44_v24 }
  0x90   :  { %v58_v29 = vmul.f32 %v42_v26, %v42_v26  ;;  %v46_v30 = vmul.f32 %v99_v20, %v45_v27 }
  0x92   :  { %v60_v33 = vsel %vm11_vm0, %v58_v29, 0.0  ;;  %v47_v34 = vadd.f32 %v99_v20, %v46_v30 }
  0x93   :  { %61 = vadd.xlane.f32.xlu1 %v60_v33 }
  0x94   :  { %v51_v37 = vsel %vm50_vm7, %v99_v20, %v47_v34 }
  0x95   :  { %v56_v38 = vsel %vm53_vm8, %v55_v35, %v51_v37 }
  0x96   :  { %v57_v39 = vmul.f32 %v56_v38, %v27_v36 }
  0x98   :  { %v59_v40 = vmul.f32 %v57_v39, %v57_v39 }
  0x9a   :  { %v63_v41 = vsel %vm11_vm0, %v59_v40, 0.0 }
  0x9b   :  { %64 = vadd.xlane.f32.xlu1 %v63_v41 }
 0x106   :  { %v62_v42 = vpop.xlane.xlu1 %61 }
 0x107   :  { %v70_v46 = vperm.slane %v62_v42, %v69_v44 }
 0x10e   :  { %v65_v45 = vpop.xlane.xlu1 %64 }
 0x10f   :  { %v71_v47 = vperm.slane %v65_v45, %v69_v44 }
 0x111   :  { %v73_v48 = vsel %vm72_vm9, %v71_v47, %v70_v46 }
 0x112   :  { %76 = vst.msk [vmem:[#allocation2] sm:$0x3] %vm75_vm10, %v73_v48 }
 0x113   :  { %87 = dma.vmem_to_hbm [thread:$0]  %s83_s10, 32, %s85_s13, [#allocation3]  }
 0x114   :  { %126 = dma.done.wait [#allocation3], 32  }
 0x115   :  { %127 = vsyncadd [#allocation3], 4294967264 }
 0x116   :  { %92 = vsyncpa [#allocation3], 1 }

</bundles_post_ra>
